<compile_context>
chip_gen: v6e
topology: v6e:2x2x1
jax: 0.10.0
libtpu: 0.0.40
codegen_flags: <defaults>
</compile_context>

<pallas_src>
import math

import jax
import jax.numpy as jnp
from jax.experimental import pallas as pl
from jax.experimental.pallas import tpu as pltpu  # noqa: F401  (TPU backend)


# ---------------------------------------------------------------------------
# Fused forward kernel: everything resident in VMEM, no grid.
# ---------------------------------------------------------------------------
def _vdcnn_fused_kernel(
    x_ref,
    c0_w_ref, c0_s_ref, c0_b_ref,
    b1c1_w_ref, b1c1_s_ref, b1c1_b_ref,
    b1c2_w_ref, b1c2_s_ref, b1c2_b_ref,
    ds_w_ref, ds_s_ref, ds_b_ref,
    b2c1_w_ref, b2c1_s_ref, b2c1_b_ref,
    b2c2_w_ref, b2c2_s_ref, b2c2_b_ref,
    fc1_w_ref, fc1_b_ref, fc2_w_ref, fc2_b_ref,
    o_ref,
):
    f32 = jnp.float32
    B = o_ref.shape[0]
    L = x_ref.shape[0] // B                       # seq length (static)
    NEG = float(jnp.finfo(jnp.float32).min)       # finite "-inf" for max-pool pad

    def bn_act(y, s_ref, b_ref, relu, residual=None):
        # folded conv-bias + eval-mode BatchNorm, optional residual, optional ReLU
        y = y * s_ref[...] + b_ref[...]
        if residual is not None:
            y = y + residual
        return jnp.maximum(y, 0.0) if relu else y

    def conv3(h, Lc, w_ref):
        """Conv1d(k=3, pad=1, stride=1) on batch-stacked (B*Lc, Cin) rows."""
        Cin = h.shape[1]
        Cout = w_ref.shape[1]
        w = w_ref[...]                            # (3*Cin, Cout)
        zrow = jnp.zeros((1, Cin), f32)
        # Per-batch zero padding so taps never bleed across batch boundaries.
        xps = [jnp.concatenate([zrow, h[b * Lc:(b + 1) * Lc, :], zrow], axis=0)
               for b in range(B)]                 # each (Lc+2, Cin)
        acc = jnp.zeros((B * Lc, Cout), f32)
        for k in range(3):                        # static taps -> shifted MXU dots
            tap = jnp.concatenate([xp[k:k + Lc, :] for xp in xps], axis=0)
            acc = acc + jnp.dot(tap, w[k * Cin:(k + 1) * Cin, :],
                                preferred_element_type=f32)
        return acc

    def maxpool_k3s2p1(h, Lc):
        """PyTorch MaxPool1d(kernel_size=3, stride=2, padding=1), batch-stacked.

        Stride-2 row decimation is done with exact 0/1 selection matmuls
        (no strided slicing, layout friendly).
        """
        C = h.shape[1]
        Lo = Lc // 2
        ii = jax.lax.broadcasted_iota(jnp.int32, (Lo, Lc), 0)
        jj = jax.lax.broadcasted_iota(jnp.int32, (Lo, Lc), 1)
        sel_even = (jj == 2 * ii).astype(f32)     # picks x[2i]
        sel_odd = (jj == 2 * ii + 1).astype(f32)  # picks x[2i+1]
        neg_row = jnp.full((1, C), NEG, f32)
        outs = []
        for b in range(B):
            xb = h[b * Lc:(b + 1) * Lc, :]
            even = jnp.dot(sel_even, xb, preferred_element_type=f32)   # x[2i]
            odd = jnp.dot(sel_odd, xb, preferred_element_type=f32)     # x[2i+1]
            prev = jnp.concatenate([neg_row, odd[:Lo - 1, :]], axis=0)  # x[2i-1]
            outs.append(jnp.maximum(jnp.maximum(even, odd), prev))
        return jnp.concatenate(outs, axis=0)      # (B*Lo, C)

    # ---- layers[0]: Conv1d(E, base, kernel_size=1)  (no BN, no ReLU) --------
    x = x_ref[...].astype(f32)                    # (B*L, E)
    h = jnp.dot(x, c0_w_ref[...], preferred_element_type=f32)
    h = bn_act(h, c0_s_ref, c0_b_ref, relu=False)

    # ---- ConvBlock(base, base, shortcut=True) --------------------------------
    res = h
    t = bn_act(conv3(h, L, b1c1_w_ref), b1c1_s_ref, b1c1_b_ref, relu=True)
    h = bn_act(conv3(t, L, b1c2_w_ref), b1c2_s_ref, b1c2_b_ref, relu=True,
               residual=res)

    # ---- MaxPool1d(3, 2, 1); Dropout == identity (inference) -----------------
    L2 = L // 2
    h = maxpool_k3s2p1(h, L)                      # (B*L2, base)

    # ---- ConvBlock(base, 2*base, shortcut=True, downsampling=Conv1x1+BN) -----
    res = bn_act(jnp.dot(h, ds_w_ref[...], preferred_element_type=f32),
                 ds_s_ref, ds_b_ref, relu=False)
    t = bn_act(conv3(h, L2, b2c1_w_ref), b2c1_s_ref, b2c1_b_ref, relu=True)
    h = bn_act(conv3(t, L2, b2c2_w_ref), b2c2_s_ref, b2c2_b_ref, relu=True,
               residual=res)

    # ---- MaxPool1d(3, 2, 1); Dropout == identity ------------------------------
    L3 = L2 // 2
    h = maxpool_k3s2p1(h, L2)                     # (B*L3, 2*base)

    # ---- AdaptiveMaxPool1d(8): identity when L3 == 8 (depth=4, seq=32) --------
    OUT_T = fc1_w_ref.shape[0]                    # 8
    if L3 != OUT_T:                               # general static-bin path
        outs = []
        for b in range(B):
            xb = h[b * L3:(b + 1) * L3, :]
            rows = []
            for i in range(OUT_T):
                s = (i * L3) // OUT_T
                e = -((-(i + 1) * L3) // OUT_T)
                rows.append(jnp.max(xb[s:e, :], axis=0, keepdims=True))
            outs.append(jnp.concatenate(rows, axis=0))
        h = jnp.concatenate(outs, axis=0)
    # h: (B*8, 2*base); Dropout == identity

    # ---- flatten (NCW order folded into fc1_w layout) + fc1/ReLU + fc2/ReLU ---
    nfc = fc1_w_ref.shape[2]
    acc = jnp.zeros((B, nfc), f32)
    for tpos in range(OUT_T):
        rows_t = jnp.concatenate(
            [h[b * OUT_T + tpos: b * OUT_T + tpos + 1, :] for b in range(B)],
            axis=0)                               # (B, 2*base) — pooled position tpos
        acc = acc + jnp.dot(rows_t, fc1_w_ref[tpos], preferred_element_type=f32)
    h1 = jnp.maximum(acc + fc1_b_ref[...], 0.0)
    h2 = jnp.maximum(jnp.dot(h1, fc2_w_ref[...], preferred_element_type=f32)
                     + fc2_b_ref[...], 0.0)
    o_ref[...] = h2.astype(o_ref.dtype)


# ---------------------------------------------------------------------------
# Wrapper: one pallas_call, whole arrays as VMEM blocks (no grid).
# ---------------------------------------------------------------------------
def vdcnn_forward(x, attention_mask, p):
    del attention_mask                            # unused by the reference forward
    B, L, E = x.shape
    assert L % 4 == 0, "seq length must be divisible by 4 (two stride-2 pools)"
    n_fc = p['fc2_w'].shape[1]
    x2 = x.reshape(B * L, E)                      # fold batch into matmul M (XLA-side)
    return pl.pallas_call(
        _vdcnn_fused_kernel,
        out_shape=jax.ShapeDtypeStruct((B, n_fc), x.dtype),
    )(
        x2,
        p['c0_w'], p['c0_s'], p['c0_b'],
        p['b1c1_w'], p['b1c1_s'], p['b1c1_b'],
        p['b1c2_w'], p['b1c2_s'], p['b1c2_b'],
        p['ds_w'], p['ds_s'], p['ds_b'],
        p['b2c1_w'], p['b2c1_s'], p['b2c1_b'],
        p['b2c2_w'], p['b2c2_s'], p['b2c2_b'],
        p['fc1_w'], p['fc1_b'], p['fc2_w'], p['fc2_b'],
    )


# ---------------------------------------------------------------------------
# Parameters (deterministic, mirrors the PyTorch __init__ for depth=4)
# ---------------------------------------------------------------------------
def init_params(key, embedding_dim, base, n_fc):
    eps = 1e-5
    keys = iter(jax.random.split(key, 16))

    def conv_w(cin, cout, k):
        std = math.sqrt(2.0 / (cin * k))          # kaiming_normal_(fan_in, relu)
        w = std * jax.random.normal(next(keys), (k, cin, cout), jnp.float32)
        return w.reshape(k * cin, cout)           # rows ordered (tap k, cin)

    def conv_b(cin, k, cout):
        bound = 1.0 / math.sqrt(cin * k)          # torch Conv1d default bias init
        return jax.random.uniform(next(keys), (cout,), jnp.float32, -bound, bound)

    def bn_fold(conv_bias, cout):
        # eval-mode BatchNorm with default params/stats: gamma=1, beta=0, mean=0, var=1
        gamma = jnp.ones((cout,), jnp.float32)
        beta = jnp.zeros((cout,), jnp.float32)
        mean = jnp.zeros((cout,), jnp.float32)
        var = jnp.ones((cout,), jnp.float32)
        scale = gamma / jnp.sqrt(var + eps)
        bias = (conv_bias - mean) * scale + beta
        return scale.reshape(1, cout), bias.reshape(1, cout)

    p = {}
    # layers[0]: Conv1d(E, base, 1) — no BN, no ReLU
    p['c0_w'] = conv_w(embedding_dim, base, 1)                      # (E, base)
    p['c0_s'] = jnp.ones((1, base), jnp.float32)
    p['c0_b'] = conv_b(embedding_dim, 1, base).reshape(1, base)

    # ConvBlock(base, base, shortcut=True)
    p['b1c1_w'] = conv_w(base, base, 3)
    p['b1c1_s'], p['b1c1_b'] = bn_fold(conv_b(base, 3, base), base)
    p['b1c2_w'] = conv_w(base, base, 3)
    p['b1c2_s'], p['b1c2_b'] = bn_fold(conv_b(base, 3, base), base)

    # downsampling: Conv1d(base, 2*base, 1, bias=False) + BN
    p['ds_w'] = conv_w(base, 2 * base, 1)
    p['ds_s'], p['ds_b'] = bn_fold(jnp.zeros((2 * base,), jnp.float32), 2 * base)

    # ConvBlock(base, 2*base, shortcut=True, downsampling=ds)
    p['b2c1_w'] = conv_w(base, 2 * base, 3)
    p['b2c1_s'], p['b2c1_b'] = bn_fold(conv_b(base, 3, 2 * base), 2 * base)
    p['b2c2_w'] = conv_w(2 * base, 2 * base, 3)
    p['b2c2_s'], p['b2c2_b'] = bn_fold(conv_b(2 * base, 3, 2 * base), 2 * base)

    # fc layers: Linear(8*2*base, n_fc), Linear(n_fc, n_fc)
    # Torch flattens NCW as flat_idx = c*8 + t; our kernel consumes pooled rows
    # per time position t, so regroup the fc1 weight ONCE here (free at init):
    # fc1_w[t, c, :] == W_torch.T[c*8 + t, :].
    C2 = 2 * base
    fin = 8 * C2
    bound1 = 1.0 / math.sqrt(fin)
    w1 = jax.random.uniform(next(keys), (fin, n_fc), jnp.float32, -bound1, bound1)
    p['fc1_w'] = w1.reshape(C2, 8, n_fc).transpose(1, 0, 2)         # (8, C2, n_fc)
    p['fc1_b'] = jax.random.uniform(next(keys), (n_fc,), jnp.float32,
                                    -bound1, bound1).reshape(1, n_fc)
    bound2 = 1.0 / math.sqrt(n_fc)
    p['fc2_w'] = jax.random.uniform(next(keys), (n_fc, n_fc), jnp.float32,
                                    -bound2, bound2)
    p['fc2_b'] = jax.random.uniform(next(keys), (n_fc,), jnp.float32,
                                    -bound2, bound2).reshape(1, n_fc)
    return p


if __name__ == "__main__":
    # depth=4 config, small shapes: batch=2, seq=32, embedding=32, base=32, fc=32
    B, L, E = 2, 32, 32
    base, n_fc = 32, 32

    key = jax.random.PRNGKey(0)
    k_param, k_x = jax.random.split(key)
    params = init_params(k_param, E, base, n_fc)

    x = jax.random.normal(k_x, (B, L, E), jnp.float32)        # (batch, seq, embed)
    attention_mask = jnp.ones((B, L), jnp.float32)            # unused, as in PyTorch

    # TODO(synk): nn.Dropout layers are identity here (inference/eval semantics).
    out = jax.jit(vdcnn_forward)(x, attention_mask, params)
    out = jax.block_until_ready(out)
    assert out.shape == (B, n_fc)
    print("KERNEL_OK")
</pallas_src>

<mosaic_0001>
module attributes {stable_mosaic.version = 11 : i64} {
  func.func @_vdcnn_fused_kernel(%arg0: memref<64x32xf32, #tpu.memory_space<vmem>>, %arg1: memref<32x32xf32, #tpu.memory_space<vmem>>, %arg2: memref<1x32xf32, #tpu.memory_space<vmem>>, %arg3: memref<1x32xf32, #tpu.memory_space<vmem>>, %arg4: memref<96x32xf32, #tpu.memory_space<vmem>>, %arg5: memref<1x32xf32, #tpu.memory_space<vmem>>, %arg6: memref<1x32xf32, #tpu.memory_space<vmem>>, %arg7: memref<96x32xf32, #tpu.memory_space<vmem>>, %arg8: memref<1x32xf32, #tpu.memory_space<vmem>>, %arg9: memref<1x32xf32, #tpu.memory_space<vmem>>, %arg10: memref<32x64xf32, #tpu.memory_space<vmem>>, %arg11: memref<1x64xf32, #tpu.memory_space<vmem>>, %arg12: memref<1x64xf32, #tpu.memory_space<vmem>>, %arg13: memref<96x64xf32, #tpu.memory_space<vmem>>, %arg14: memref<1x64xf32, #tpu.memory_space<vmem>>, %arg15: memref<1x64xf32, #tpu.memory_space<vmem>>, %arg16: memref<192x64xf32, #tpu.memory_space<vmem>>, %arg17: memref<1x64xf32, #tpu.memory_space<vmem>>, %arg18: memref<1x64xf32, #tpu.memory_space<vmem>>, %arg19: memref<8x64x32xf32, #tpu.memory_space<vmem>>, %arg20: memref<1x32xf32, #tpu.memory_space<vmem>>, %arg21: memref<32x32xf32, #tpu.memory_space<vmem>>, %arg22: memref<1x32xf32, #tpu.memory_space<vmem>>, %arg23: memref<2x32xf32, #tpu.memory_space<vmem>>) attributes {dimension_semantics = [], scalar_prefetch = 0 : i64, scratch_operands = 0 : i64, tpu.core_type = #tpu.core_type<tc>} {
    %c0 = arith.constant 0 : index
    %c0_0 = arith.constant 0 : index
    %0 = vector.load %arg0[%c0, %c0_0] : memref<64x32xf32, #tpu.memory_space<vmem>>, vector<64x32xf32>
    %c0_1 = arith.constant 0 : index
    %c0_2 = arith.constant 0 : index
    %1 = vector.load %arg1[%c0_1, %c0_2] : memref<32x32xf32, #tpu.memory_space<vmem>>, vector<32x32xf32>
    %cst = arith.constant dense<0.000000e+00> : vector<64x32xf32>
    %2 = tpu.matmul %0, %1, %cst {dimension_numbers = #tpu.dot_dimension_numbers<[1], [0], [0], [1], [0, 0, 1, 1], [], []>} : vector<64x32xf32>, vector<32x32xf32>, vector<64x32xf32> -> vector<64x32xf32>
    %c0_3 = arith.constant 0 : index
    %c0_4 = arith.constant 0 : index
    %3 = vector.load %arg2[%c0_3, %c0_4] : memref<1x32xf32, #tpu.memory_space<vmem>>, vector<1x32xf32>
    %4 = vector.broadcast %3 : vector<1x32xf32> to vector<64x32xf32>
    %5 = arith.mulf %2, %4 : vector<64x32xf32>
    %c0_5 = arith.constant 0 : index
    %c0_6 = arith.constant 0 : index
    %6 = vector.load %arg3[%c0_5, %c0_6] : memref<1x32xf32, #tpu.memory_space<vmem>>, vector<1x32xf32>
    %7 = vector.broadcast %6 : vector<1x32xf32> to vector<64x32xf32>
    %8 = arith.addf %5, %7 : vector<64x32xf32>
    %c0_7 = arith.constant 0 : index
    %c0_8 = arith.constant 0 : index
    %9 = vector.load %arg4[%c0_7, %c0_8] : memref<96x32xf32, #tpu.memory_space<vmem>>, vector<96x32xf32>
    %cst_9 = arith.constant 0.000000e+00 : f32
    %10 = vector.broadcast %cst_9 : f32 to vector<1x32xf32>
    %11 = vector.extract_strided_slice %8 {offsets = [0, 0], sizes = [32, 32], strides = [1, 1]} : vector<64x32xf32> to vector<32x32xf32>
    %12 = tpu.concatenate %10, %11, %10 in 0 : vector<1x32xf32>, vector<32x32xf32>, vector<1x32xf32> -> vector<34x32xf32>
    %13 = vector.extract_strided_slice %8 {offsets = [32, 0], sizes = [32, 32], strides = [1, 1]} : vector<64x32xf32> to vector<32x32xf32>
    %14 = tpu.concatenate %10, %13, %10 in 0 : vector<1x32xf32>, vector<32x32xf32>, vector<1x32xf32> -> vector<34x32xf32>
    %cst_10 = arith.constant 0.000000e+00 : f32
    %15 = vector.broadcast %cst_10 : f32 to vector<64x32xf32>
    %16 = vector.extract_strided_slice %12 {offsets = [0, 0], sizes = [32, 32], strides = [1, 1]} : vector<34x32xf32> to vector<32x32xf32>
    %17 = vector.extract_strided_slice %14 {offsets = [0, 0], sizes = [32, 32], strides = [1, 1]} : vector<34x32xf32> to vector<32x32xf32>
    %18 = tpu.concatenate %16, %17 in 0 : vector<32x32xf32>, vector<32x32xf32> -> vector<64x32xf32>
    %19 = vector.extract_strided_slice %9 {offsets = [0, 0], sizes = [32, 32], strides = [1, 1]} : vector<96x32xf32> to vector<32x32xf32>
    %cst_11 = arith.constant dense<0.000000e+00> : vector<64x32xf32>
    %20 = tpu.matmul %18, %19, %cst_11 {dimension_numbers = #tpu.dot_dimension_numbers<[1], [0], [0], [1], [0, 0, 1, 1], [], []>} : vector<64x32xf32>, vector<32x32xf32>, vector<64x32xf32> -> vector<64x32xf32>
    %21 = arith.addf %15, %20 : vector<64x32xf32>
    %22 = vector.extract_strided_slice %12 {offsets = [1, 0], sizes = [32, 32], strides = [1, 1]} : vector<34x32xf32> to vector<32x32xf32>
    %23 = vector.extract_strided_slice %14 {offsets = [1, 0], sizes = [32, 32], strides = [1, 1]} : vector<34x32xf32> to vector<32x32xf32>
    %24 = tpu.concatenate %22, %23 in 0 : vector<32x32xf32>, vector<32x32xf32> -> vector<64x32xf32>
    %25 = vector.extract_strided_slice %9 {offsets = [32, 0], sizes = [32, 32], strides = [1, 1]} : vector<96x32xf32> to vector<32x32xf32>
    %cst_12 = arith.constant dense<0.000000e+00> : vector<64x32xf32>
    %26 = tpu.matmul %24, %25, %cst_12 {dimension_numbers = #tpu.dot_dimension_numbers<[1], [0], [0], [1], [0, 0, 1, 1], [], []>} : vector<64x32xf32>, vector<32x32xf32>, vector<64x32xf32> -> vector<64x32xf32>
    %27 = arith.addf %21, %26 : vector<64x32xf32>
    %28 = vector.extract_strided_slice %12 {offsets = [2, 0], sizes = [32, 32], strides = [1, 1]} : vector<34x32xf32> to vector<32x32xf32>
    %29 = vector.extract_strided_slice %14 {offsets = [2, 0], sizes = [32, 32], strides = [1, 1]} : vector<34x32xf32> to vector<32x32xf32>
    %30 = tpu.concatenate %28, %29 in 0 : vector<32x32xf32>, vector<32x32xf32> -> vector<64x32xf32>
    %31 = vector.extract_strided_slice %9 {offsets = [64, 0], sizes = [32, 32], strides = [1, 1]} : vector<96x32xf32> to vector<32x32xf32>
    %cst_13 = arith.constant dense<0.000000e+00> : vector<64x32xf32>
    %32 = tpu.matmul %30, %31, %cst_13 {dimension_numbers = #tpu.dot_dimension_numbers<[1], [0], [0], [1], [0, 0, 1, 1], [], []>} : vector<64x32xf32>, vector<32x32xf32>, vector<64x32xf32> -> vector<64x32xf32>
    %33 = arith.addf %27, %32 : vector<64x32xf32>
    %c0_14 = arith.constant 0 : index
    %c0_15 = arith.constant 0 : index
    %34 = vector.load %arg5[%c0_14, %c0_15] : memref<1x32xf32, #tpu.memory_space<vmem>>, vector<1x32xf32>
    %35 = vector.broadcast %34 : vector<1x32xf32> to vector<64x32xf32>
    %36 = arith.mulf %33, %35 : vector<64x32xf32>
    %c0_16 = arith.constant 0 : index
    %c0_17 = arith.constant 0 : index
    %37 = vector.load %arg6[%c0_16, %c0_17] : memref<1x32xf32, #tpu.memory_space<vmem>>, vector<1x32xf32>
    %38 = vector.broadcast %37 : vector<1x32xf32> to vector<64x32xf32>
    %39 = arith.addf %36, %38 : vector<64x32xf32>
    %cst_18 = arith.constant 0.000000e+00 : f32
    %40 = vector.broadcast %cst_18 : f32 to vector<64x32xf32>
    %41 = arith.maximumf %39, %40 : vector<64x32xf32>
    %c0_19 = arith.constant 0 : index
    %c0_20 = arith.constant 0 : index
    %42 = vector.load %arg7[%c0_19, %c0_20] : memref<96x32xf32, #tpu.memory_space<vmem>>, vector<96x32xf32>
    %cst_21 = arith.constant 0.000000e+00 : f32
    %43 = vector.broadcast %cst_21 : f32 to vector<1x32xf32>
    %44 = vector.extract_strided_slice %41 {offsets = [0, 0], sizes = [32, 32], strides = [1, 1]} : vector<64x32xf32> to vector<32x32xf32>
    %45 = tpu.concatenate %43, %44, %43 in 0 : vector<1x32xf32>, vector<32x32xf32>, vector<1x32xf32> -> vector<34x32xf32>
    %46 = vector.extract_strided_slice %41 {offsets = [32, 0], sizes = [32, 32], strides = [1, 1]} : vector<64x32xf32> to vector<32x32xf32>
    %47 = tpu.concatenate %43, %46, %43 in 0 : vector<1x32xf32>, vector<32x32xf32>, vector<1x32xf32> -> vector<34x32xf32>
    %cst_22 = arith.constant 0.000000e+00 : f32
    %48 = vector.broadcast %cst_22 : f32 to vector<64x32xf32>
    %49 = vector.extract_strided_slice %45 {offsets = [0, 0], sizes = [32, 32], strides = [1, 1]} : vector<34x32xf32> to vector<32x32xf32>
    %50 = vector.extract_strided_slice %47 {offsets = [0, 0], sizes = [32, 32], strides = [1, 1]} : vector<34x32xf32> to vector<32x32xf32>
    %51 = tpu.concatenate %49, %50 in 0 : vector<32x32xf32>, vector<32x32xf32> -> vector<64x32xf32>
    %52 = vector.extract_strided_slice %42 {offsets = [0, 0], sizes = [32, 32], strides = [1, 1]} : vector<96x32xf32> to vector<32x32xf32>
    %cst_23 = arith.constant dense<0.000000e+00> : vector<64x32xf32>
    %53 = tpu.matmul %51, %52, %cst_23 {dimension_numbers = #tpu.dot_dimension_numbers<[1], [0], [0], [1], [0, 0, 1, 1], [], []>} : vector<64x32xf32>, vector<32x32xf32>, vector<64x32xf32> -> vector<64x32xf32>
    %54 = arith.addf %48, %53 : vector<64x32xf32>
    %55 = vector.extract_strided_slice %45 {offsets = [1, 0], sizes = [32, 32], strides = [1, 1]} : vector<34x32xf32> to vector<32x32xf32>
    %56 = vector.extract_strided_slice %47 {offsets = [1, 0], sizes = [32, 32], strides = [1, 1]} : vector<34x32xf32> to vector<32x32xf32>
    %57 = tpu.concatenate %55, %56 in 0 : vector<32x32xf32>, vector<32x32xf32> -> vector<64x32xf32>
    %58 = vector.extract_strided_slice %42 {offsets = [32, 0], sizes = [32, 32], strides = [1, 1]} : vector<96x32xf32> to vector<32x32xf32>
    %cst_24 = arith.constant dense<0.000000e+00> : vector<64x32xf32>
    %59 = tpu.matmul %57, %58, %cst_24 {dimension_numbers = #tpu.dot_dimension_numbers<[1], [0], [0], [1], [0, 0, 1, 1], [], []>} : vector<64x32xf32>, vector<32x32xf32>, vector<64x32xf32> -> vector<64x32xf32>
    %60 = arith.addf %54, %59 : vector<64x32xf32>
    %61 = vector.extract_strided_slice %45 {offsets = [2, 0], sizes = [32, 32], strides = [1, 1]} : vector<34x32xf32> to vector<32x32xf32>
    %62 = vector.extract_strided_slice %47 {offsets = [2, 0], sizes = [32, 32], strides = [1, 1]} : vector<34x32xf32> to vector<32x32xf32>
    %63 = tpu.concatenate %61, %62 in 0 : vector<32x32xf32>, vector<32x32xf32> -> vector<64x32xf32>
    %64 = vector.extract_strided_slice %42 {offsets = [64, 0], sizes = [32, 32], strides = [1, 1]} : vector<96x32xf32> to vector<32x32xf32>
    %cst_25 = arith.constant dense<0.000000e+00> : vector<64x32xf32>
    %65 = tpu.matmul %63, %64, %cst_25 {dimension_numbers = #tpu.dot_dimension_numbers<[1], [0], [0], [1], [0, 0, 1, 1], [], []>} : vector<64x32xf32>, vector<32x32xf32>, vector<64x32xf32> -> vector<64x32xf32>
    %66 = arith.addf %60, %65 : vector<64x32xf32>
    %c0_26 = arith.constant 0 : index
    %c0_27 = arith.constant 0 : index
    %67 = vector.load %arg8[%c0_26, %c0_27] : memref<1x32xf32, #tpu.memory_space<vmem>>, vector<1x32xf32>
    %68 = vector.broadcast %67 : vector<1x32xf32> to vector<64x32xf32>
    %69 = arith.mulf %66, %68 : vector<64x32xf32>
    %c0_28 = arith.constant 0 : index
    %c0_29 = arith.constant 0 : index
    %70 = vector.load %arg9[%c0_28, %c0_29] : memref<1x32xf32, #tpu.memory_space<vmem>>, vector<1x32xf32>
    %71 = vector.broadcast %70 : vector<1x32xf32> to vector<64x32xf32>
    %72 = arith.addf %69, %71 : vector<64x32xf32>
    %73 = arith.addf %72, %8 : vector<64x32xf32>
    %cst_30 = arith.constant 0.000000e+00 : f32
    %74 = vector.broadcast %cst_30 : f32 to vector<64x32xf32>
    %75 = arith.maximumf %73, %74 : vector<64x32xf32>
    %76 = tpu.iota {dimensions = array<i32: 0>} : vector<16x32xi32>
    %77 = tpu.iota {dimensions = array<i32: 1>} : vector<16x32xi32>
    %c2_i32 = arith.constant 2 : i32
    %78 = vector.broadcast %c2_i32 : i32 to vector<16x32xi32>
    %79 = arith.muli %78, %76 : vector<16x32xi32>
    %80 = arith.cmpi eq, %77, %79 : vector<16x32xi32>
    %81 = arith.extui %80 : vector<16x32xi1> to vector<16x32xi32>
    %82 = arith.sitofp %81 : vector<16x32xi32> to vector<16x32xf32>
    %c2_i32_31 = arith.constant 2 : i32
    %83 = vector.broadcast %c2_i32_31 : i32 to vector<16x32xi32>
    %84 = arith.muli %83, %76 : vector<16x32xi32>
    %c1_i32 = arith.constant 1 : i32
    %85 = vector.broadcast %c1_i32 : i32 to vector<16x32xi32>
    %86 = arith.addi %84, %85 : vector<16x32xi32>
    %87 = arith.cmpi eq, %77, %86 : vector<16x32xi32>
    %88 = arith.extui %87 : vector<16x32xi1> to vector<16x32xi32>
    %89 = arith.sitofp %88 : vector<16x32xi32> to vector<16x32xf32>
    %cst_32 = arith.constant -3.40282347E+38 : f32
    %90 = vector.broadcast %cst_32 : f32 to vector<1x32xf32>
    %91 = vector.extract_strided_slice %75 {offsets = [0, 0], sizes = [32, 32], strides = [1, 1]} : vector<64x32xf32> to vector<32x32xf32>
    %cst_33 = arith.constant dense<0.000000e+00> : vector<16x32xf32>
    %92 = tpu.matmul %82, %91, %cst_33 {dimension_numbers = #tpu.dot_dimension_numbers<[1], [0], [0], [1], [0, 0, 1, 1], [], []>} : vector<16x32xf32>, vector<32x32xf32>, vector<16x32xf32> -> vector<16x32xf32>
    %cst_34 = arith.constant dense<0.000000e+00> : vector<16x32xf32>
    %93 = tpu.matmul %89, %91, %cst_34 {dimension_numbers = #tpu.dot_dimension_numbers<[1], [0], [0], [1], [0, 0, 1, 1], [], []>} : vector<16x32xf32>, vector<32x32xf32>, vector<16x32xf32> -> vector<16x32xf32>
    %94 = vector.extract_strided_slice %93 {offsets = [0, 0], sizes = [15, 32], strides = [1, 1]} : vector<16x32xf32> to vector<15x32xf32>
    %95 = tpu.concatenate %90, %94 in 0 : vector<1x32xf32>, vector<15x32xf32> -> vector<16x32xf32>
    %96 = arith.maximumf %92, %93 : vector<16x32xf32>
    %97 = arith.maximumf %96, %95 : vector<16x32xf32>
    %98 = vector.extract_strided_slice %75 {offsets = [32, 0], sizes = [32, 32], strides = [1, 1]} : vector<64x32xf32> to vector<32x32xf32>
    %cst_35 = arith.constant dense<0.000000e+00> : vector<16x32xf32>
    %99 = tpu.matmul %82, %98, %cst_35 {dimension_numbers = #tpu.dot_dimension_numbers<[1], [0], [0], [1], [0, 0, 1, 1], [], []>} : vector<16x32xf32>, vector<32x32xf32>, vector<16x32xf32> -> vector<16x32xf32>
    %cst_36 = arith.constant dense<0.000000e+00> : vector<16x32xf32>
    %100 = tpu.matmul %89, %98, %cst_36 {dimension_numbers = #tpu.dot_dimension_numbers<[1], [0], [0], [1], [0, 0, 1, 1], [], []>} : vector<16x32xf32>, vector<32x32xf32>, vector<16x32xf32> -> vector<16x32xf32>
    %101 = vector.extract_strided_slice %100 {offsets = [0, 0], sizes = [15, 32], strides = [1, 1]} : vector<16x32xf32> to vector<15x32xf32>
    %102 = tpu.concatenate %90, %101 in 0 : vector<1x32xf32>, vector<15x32xf32> -> vector<16x32xf32>
    %103 = arith.maximumf %99, %100 : vector<16x32xf32>
    %104 = arith.maximumf %103, %102 : vector<16x32xf32>
    %105 = tpu.concatenate %97, %104 in 0 : vector<16x32xf32>, vector<16x32xf32> -> vector<32x32xf32>
    %c0_37 = arith.constant 0 : index
    %c0_38 = arith.constant 0 : index
    %106 = vector.load %arg10[%c0_37, %c0_38] : memref<32x64xf32, #tpu.memory_space<vmem>>, vector<32x64xf32>
    %cst_39 = arith.constant dense<0.000000e+00> : vector<32x64xf32>
    %107 = tpu.matmul %105, %106, %cst_39 {dimension_numbers = #tpu.dot_dimension_numbers<[1], [0], [0], [1], [0, 0, 1, 1], [], []>} : vector<32x32xf32>, vector<32x64xf32>, vector<32x64xf32> -> vector<32x64xf32>
    %c0_40 = arith.constant 0 : index
    %c0_41 = arith.constant 0 : index
    %108 = vector.load %arg11[%c0_40, %c0_41] : memref<1x64xf32, #tpu.memory_space<vmem>>, vector<1x64xf32>
    %109 = vector.broadcast %108 : vector<1x64xf32> to vector<32x64xf32>
    %110 = arith.mulf %107, %109 : vector<32x64xf32>
    %c0_42 = arith.constant 0 : index
    %c0_43 = arith.constant 0 : index
    %111 = vector.load %arg12[%c0_42, %c0_43] : memref<1x64xf32, #tpu.memory_space<vmem>>, vector<1x64xf32>
    %112 = vector.broadcast %111 : vector<1x64xf32> to vector<32x64xf32>
    %113 = arith.addf %110, %112 : vector<32x64xf32>
    %c0_44 = arith.constant 0 : index
    %c0_45 = arith.constant 0 : index
    %114 = vector.load %arg13[%c0_44, %c0_45] : memref<96x64xf32, #tpu.memory_space<vmem>>, vector<96x64xf32>
    %cst_46 = arith.constant 0.000000e+00 : f32
    %115 = vector.broadcast %cst_46 : f32 to vector<1x32xf32>
    %116 = vector.extract_strided_slice %105 {offsets = [0, 0], sizes = [16, 32], strides = [1, 1]} : vector<32x32xf32> to vector<16x32xf32>
    %117 = tpu.concatenate %115, %116, %115 in 0 : vector<1x32xf32>, vector<16x32xf32>, vector<1x32xf32> -> vector<18x32xf32>
    %118 = vector.extract_strided_slice %105 {offsets = [16, 0], sizes = [16, 32], strides = [1, 1]} : vector<32x32xf32> to vector<16x32xf32>
    %119 = tpu.concatenate %115, %118, %115 in 0 : vector<1x32xf32>, vector<16x32xf32>, vector<1x32xf32> -> vector<18x32xf32>
    %cst_47 = arith.constant 0.000000e+00 : f32
    %120 = vector.broadcast %cst_47 : f32 to vector<32x64xf32>
    %121 = vector.extract_strided_slice %117 {offsets = [0, 0], sizes = [16, 32], strides = [1, 1]} : vector<18x32xf32> to vector<16x32xf32>
    %122 = vector.extract_strided_slice %119 {offsets = [0, 0], sizes = [16, 32], strides = [1, 1]} : vector<18x32xf32> to vector<16x32xf32>
    %123 = tpu.concatenate %121, %122 in 0 : vector<16x32xf32>, vector<16x32xf32> -> vector<32x32xf32>
    %124 = vector.extract_strided_slice %114 {offsets = [0, 0], sizes = [32, 64], strides = [1, 1]} : vector<96x64xf32> to vector<32x64xf32>
    %cst_48 = arith.constant dense<0.000000e+00> : vector<32x64xf32>
    %125 = tpu.matmul %123, %124, %cst_48 {dimension_numbers = #tpu.dot_dimension_numbers<[1], [0], [0], [1], [0, 0, 1, 1], [], []>} : vector<32x32xf32>, vector<32x64xf32>, vector<32x64xf32> -> vector<32x64xf32>
    %126 = arith.addf %120, %125 : vector<32x64xf32>
    %127 = vector.extract_strided_slice %117 {offsets = [1, 0], sizes = [16, 32], strides = [1, 1]} : vector<18x32xf32> to vector<16x32xf32>
    %128 = vector.extract_strided_slice %119 {offsets = [1, 0], sizes = [16, 32], strides = [1, 1]} : vector<18x32xf32> to vector<16x32xf32>
    %129 = tpu.concatenate %127, %128 in 0 : vector<16x32xf32>, vector<16x32xf32> -> vector<32x32xf32>
    %130 = vector.extract_strided_slice %114 {offsets = [32, 0], sizes = [32, 64], strides = [1, 1]} : vector<96x64xf32> to vector<32x64xf32>
    %cst_49 = arith.constant dense<0.000000e+00> : vector<32x64xf32>
    %131 = tpu.matmul %129, %130, %cst_49 {dimension_numbers = #tpu.dot_dimension_numbers<[1], [0], [0], [1], [0, 0, 1, 1], [], []>} : vector<32x32xf32>, vector<32x64xf32>, vector<32x64xf32> -> vector<32x64xf32>
    %132 = arith.addf %126, %131 : vector<32x64xf32>
    %133 = vector.extract_strided_slice %117 {offsets = [2, 0], sizes = [16, 32], strides = [1, 1]} : vector<18x32xf32> to vector<16x32xf32>
    %134 = vector.extract_strided_slice %119 {offsets = [2, 0], sizes = [16, 32], strides = [1, 1]} : vector<18x32xf32> to vector<16x32xf32>
    %135 = tpu.concatenate %133, %134 in 0 : vector<16x32xf32>, vector<16x32xf32> -> vector<32x32xf32>
    %136 = vector.extract_strided_slice %114 {offsets = [64, 0], sizes = [32, 64], strides = [1, 1]} : vector<96x64xf32> to vector<32x64xf32>
    %cst_50 = arith.constant dense<0.000000e+00> : vector<32x64xf32>
    %137 = tpu.matmul %135, %136, %cst_50 {dimension_numbers = #tpu.dot_dimension_numbers<[1], [0], [0], [1], [0, 0, 1, 1], [], []>} : vector<32x32xf32>, vector<32x64xf32>, vector<32x64xf32> -> vector<32x64xf32>
    %138 = arith.addf %132, %137 : vector<32x64xf32>
    %c0_51 = arith.constant 0 : index
    %c0_52 = arith.constant 0 : index
    %139 = vector.load %arg14[%c0_51, %c0_52] : memref<1x64xf32, #tpu.memory_space<vmem>>, vector<1x64xf32>
    %140 = vector.broadcast %139 : vector<1x64xf32> to vector<32x64xf32>
    %141 = arith.mulf %138, %140 : vector<32x64xf32>
    %c0_53 = arith.constant 0 : index
    %c0_54 = arith.constant 0 : index
    %142 = vector.load %arg15[%c0_53, %c0_54] : memref<1x64xf32, #tpu.memory_space<vmem>>, vector<1x64xf32>
    %143 = vector.broadcast %142 : vector<1x64xf32> to vector<32x64xf32>
    %144 = arith.addf %141, %143 : vector<32x64xf32>
    %cst_55 = arith.constant 0.000000e+00 : f32
    %145 = vector.broadcast %cst_55 : f32 to vector<32x64xf32>
    %146 = arith.maximumf %144, %145 : vector<32x64xf32>
    %c0_56 = arith.constant 0 : index
    %c0_57 = arith.constant 0 : index
    %147 = vector.load %arg16[%c0_56, %c0_57] : memref<192x64xf32, #tpu.memory_space<vmem>>, vector<192x64xf32>
    %cst_58 = arith.constant 0.000000e+00 : f32
    %148 = vector.broadcast %cst_58 : f32 to vector<1x64xf32>
    %149 = vector.extract_strided_slice %146 {offsets = [0, 0], sizes = [16, 64], strides = [1, 1]} : vector<32x64xf32> to vector<16x64xf32>
    %150 = tpu.concatenate %148, %149, %148 in 0 : vector<1x64xf32>, vector<16x64xf32>, vector<1x64xf32> -> vector<18x64xf32>
    %151 = vector.extract_strided_slice %146 {offsets = [16, 0], sizes = [16, 64], strides = [1, 1]} : vector<32x64xf32> to vector<16x64xf32>
    %152 = tpu.concatenate %148, %151, %148 in 0 : vector<1x64xf32>, vector<16x64xf32>, vector<1x64xf32> -> vector<18x64xf32>
    %cst_59 = arith.constant 0.000000e+00 : f32
    %153 = vector.broadcast %cst_59 : f32 to vector<32x64xf32>
    %154 = vector.extract_strided_slice %150 {offsets = [0, 0], sizes = [16, 64], strides = [1, 1]} : vector<18x64xf32> to vector<16x64xf32>
    %155 = vector.extract_strided_slice %152 {offsets = [0, 0], sizes = [16, 64], strides = [1, 1]} : vector<18x64xf32> to vector<16x64xf32>
    %156 = tpu.concatenate %154, %155 in 0 : vector<16x64xf32>, vector<16x64xf32> -> vector<32x64xf32>
    %157 = vector.extract_strided_slice %147 {offsets = [0, 0], sizes = [64, 64], strides = [1, 1]} : vector<192x64xf32> to vector<64x64xf32>
    %cst_60 = arith.constant dense<0.000000e+00> : vector<32x64xf32>
    %158 = tpu.matmul %156, %157, %cst_60 {dimension_numbers = #tpu.dot_dimension_numbers<[1], [0], [0], [1], [0, 0, 1, 1], [], []>} : vector<32x64xf32>, vector<64x64xf32>, vector<32x64xf32> -> vector<32x64xf32>
    %159 = arith.addf %153, %158 : vector<32x64xf32>
    %160 = vector.extract_strided_slice %150 {offsets = [1, 0], sizes = [16, 64], strides = [1, 1]} : vector<18x64xf32> to vector<16x64xf32>
    %161 = vector.extract_strided_slice %152 {offsets = [1, 0], sizes = [16, 64], strides = [1, 1]} : vector<18x64xf32> to vector<16x64xf32>
    %162 = tpu.concatenate %160, %161 in 0 : vector<16x64xf32>, vector<16x64xf32> -> vector<32x64xf32>
    %163 = vector.extract_strided_slice %147 {offsets = [64, 0], sizes = [64, 64], strides = [1, 1]} : vector<192x64xf32> to vector<64x64xf32>
    %cst_61 = arith.constant dense<0.000000e+00> : vector<32x64xf32>
    %164 = tpu.matmul %162, %163, %cst_61 {dimension_numbers = #tpu.dot_dimension_numbers<[1], [0], [0], [1], [0, 0, 1, 1], [], []>} : vector<32x64xf32>, vector<64x64xf32>, vector<32x64xf32> -> vector<32x64xf32>
    %165 = arith.addf %159, %164 : vector<32x64xf32>
    %166 = vector.extract_strided_slice %150 {offsets = [2, 0], sizes = [16, 64], strides = [1, 1]} : vector<18x64xf32> to vector<16x64xf32>
    %167 = vector.extract_strided_slice %152 {offsets = [2, 0], sizes = [16, 64], strides = [1, 1]} : vector<18x64xf32> to vector<16x64xf32>
    %168 = tpu.concatenate %166, %167 in 0 : vector<16x64xf32>, vector<16x64xf32> -> vector<32x64xf32>
    %169 = vector.extract_strided_slice %147 {offsets = [128, 0], sizes = [64, 64], strides = [1, 1]} : vector<192x64xf32> to vector<64x64xf32>
    %cst_62 = arith.constant dense<0.000000e+00> : vector<32x64xf32>
    %170 = tpu.matmul %168, %169, %cst_62 {dimension_numbers = #tpu.dot_dimension_numbers<[1], [0], [0], [1], [0, 0, 1, 1], [], []>} : vector<32x64xf32>, vector<64x64xf32>, vector<32x64xf32> -> vector<32x64xf32>
    %171 = arith.addf %165, %170 : vector<32x64xf32>
    %c0_63 = arith.constant 0 : index
    %c0_64 = arith.constant 0 : index
    %172 = vector.load %arg17[%c0_63, %c0_64] : memref<1x64xf32, #tpu.memory_space<vmem>>, vector<1x64xf32>
    %173 = vector.broadcast %172 : vector<1x64xf32> to vector<32x64xf32>
    %174 = arith.mulf %171, %173 : vector<32x64xf32>
    %c0_65 = arith.constant 0 : index
    %c0_66 = arith.constant 0 : index
    %175 = vector.load %arg18[%c0_65, %c0_66] : memref<1x64xf32, #tpu.memory_space<vmem>>, vector<1x64xf32>
    %176 = vector.broadcast %175 : vector<1x64xf32> to vector<32x64xf32>
    %177 = arith.addf %174, %176 : vector<32x64xf32>
    %178 = arith.addf %177, %113 : vector<32x64xf32>
    %cst_67 = arith.constant 0.000000e+00 : f32
    %179 = vector.broadcast %cst_67 : f32 to vector<32x64xf32>
    %180 = arith.maximumf %178, %179 : vector<32x64xf32>
    %181 = tpu.iota {dimensions = array<i32: 0>} : vector<8x16xi32>
    %182 = tpu.iota {dimensions = array<i32: 1>} : vector<8x16xi32>
    %c2_i32_68 = arith.constant 2 : i32
    %183 = vector.broadcast %c2_i32_68 : i32 to vector<8x16xi32>
    %184 = arith.muli %183, %181 : vector<8x16xi32>
    %185 = arith.cmpi eq, %182, %184 : vector<8x16xi32>
    %186 = arith.extui %185 : vector<8x16xi1> to vector<8x16xi32>
    %187 = arith.sitofp %186 : vector<8x16xi32> to vector<8x16xf32>
    %c2_i32_69 = arith.constant 2 : i32
    %188 = vector.broadcast %c2_i32_69 : i32 to vector<8x16xi32>
    %189 = arith.muli %188, %181 : vector<8x16xi32>
    %c1_i32_70 = arith.constant 1 : i32
    %190 = vector.broadcast %c1_i32_70 : i32 to vector<8x16xi32>
    %191 = arith.addi %189, %190 : vector<8x16xi32>
    %192 = arith.cmpi eq, %182, %191 : vector<8x16xi32>
    %193 = arith.extui %192 : vector<8x16xi1> to vector<8x16xi32>
    %194 = arith.sitofp %193 : vector<8x16xi32> to vector<8x16xf32>
    %cst_71 = arith.constant -3.40282347E+38 : f32
    %195 = vector.broadcast %cst_71 : f32 to vector<1x64xf32>
    %196 = vector.extract_strided_slice %180 {offsets = [0, 0], sizes = [16, 64], strides = [1, 1]} : vector<32x64xf32> to vector<16x64xf32>
    %cst_72 = arith.constant dense<0.000000e+00> : vector<8x64xf32>
    %197 = tpu.matmul %187, %196, %cst_72 {dimension_numbers = #tpu.dot_dimension_numbers<[1], [0], [0], [1], [0, 0, 1, 1], [], []>} : vector<8x16xf32>, vector<16x64xf32>, vector<8x64xf32> -> vector<8x64xf32>
    %cst_73 = arith.constant dense<0.000000e+00> : vector<8x64xf32>
    %198 = tpu.matmul %194, %196, %cst_73 {dimension_numbers = #tpu.dot_dimension_numbers<[1], [0], [0], [1], [0, 0, 1, 1], [], []>} : vector<8x16xf32>, vector<16x64xf32>, vector<8x64xf32> -> vector<8x64xf32>
    %199 = vector.extract_strided_slice %198 {offsets = [0, 0], sizes = [7, 64], strides = [1, 1]} : vector<8x64xf32> to vector<7x64xf32>
    %200 = tpu.concatenate %195, %199 in 0 : vector<1x64xf32>, vector<7x64xf32> -> vector<8x64xf32>
    %201 = arith.maximumf %197, %198 : vector<8x64xf32>
    %202 = arith.maximumf %201, %200 : vector<8x64xf32>
    %203 = vector.extract_strided_slice %180 {offsets = [16, 0], sizes = [16, 64], strides = [1, 1]} : vector<32x64xf32> to vector<16x64xf32>
    %cst_74 = arith.constant dense<0.000000e+00> : vector<8x64xf32>
    %204 = tpu.matmul %187, %203, %cst_74 {dimension_numbers = #tpu.dot_dimension_numbers<[1], [0], [0], [1], [0, 0, 1, 1], [], []>} : vector<8x16xf32>, vector<16x64xf32>, vector<8x64xf32> -> vector<8x64xf32>
    %cst_75 = arith.constant dense<0.000000e+00> : vector<8x64xf32>
    %205 = tpu.matmul %194, %203, %cst_75 {dimension_numbers = #tpu.dot_dimension_numbers<[1], [0], [0], [1], [0, 0, 1, 1], [], []>} : vector<8x16xf32>, vector<16x64xf32>, vector<8x64xf32> -> vector<8x64xf32>
    %206 = vector.extract_strided_slice %205 {offsets = [0, 0], sizes = [7, 64], strides = [1, 1]} : vector<8x64xf32> to vector<7x64xf32>
    %207 = tpu.concatenate %195, %206 in 0 : vector<1x64xf32>, vector<7x64xf32> -> vector<8x64xf32>
    %208 = arith.maximumf %204, %205 : vector<8x64xf32>
    %209 = arith.maximumf %208, %207 : vector<8x64xf32>
    %210 = tpu.concatenate %202, %209 in 0 : vector<8x64xf32>, vector<8x64xf32> -> vector<16x64xf32>
    %cst_76 = arith.constant 0.000000e+00 : f32
    %211 = vector.broadcast %cst_76 : f32 to vector<2x32xf32>
    %212 = vector.extract_strided_slice %210 {offsets = [0, 0], sizes = [1, 64], strides = [1, 1]} : vector<16x64xf32> to vector<1x64xf32>
    %213 = vector.extract_strided_slice %210 {offsets = [8, 0], sizes = [1, 64], strides = [1, 1]} : vector<16x64xf32> to vector<1x64xf32>
    %214 = tpu.concatenate %212, %213 in 0 : vector<1x64xf32>, vector<1x64xf32> -> vector<2x64xf32>
    %c0_77 = arith.constant 0 : index
    %c0_78 = arith.constant 0 : index
    %c0_79 = arith.constant 0 : index
    %215 = vector.load %arg19[%c0_77, %c0_78, %c0_79] : memref<8x64x32xf32, #tpu.memory_space<vmem>>, vector<1x64x32xf32>
    %216 = vector.shape_cast %215 : vector<1x64x32xf32> to vector<64x32xf32>
    %cst_80 = arith.constant dense<0.000000e+00> : vector<2x32xf32>
    %217 = tpu.matmul %214, %216, %cst_80 {dimension_numbers = #tpu.dot_dimension_numbers<[1], [0], [0], [1], [0, 0, 1, 1], [], []>} : vector<2x64xf32>, vector<64x32xf32>, vector<2x32xf32> -> vector<2x32xf32>
    %218 = arith.addf %211, %217 : vector<2x32xf32>
    %219 = vector.extract_strided_slice %210 {offsets = [1, 0], sizes = [1, 64], strides = [1, 1]} : vector<16x64xf32> to vector<1x64xf32>
    %220 = vector.extract_strided_slice %210 {offsets = [9, 0], sizes = [1, 64], strides = [1, 1]} : vector<16x64xf32> to vector<1x64xf32>
    %221 = tpu.concatenate %219, %220 in 0 : vector<1x64xf32>, vector<1x64xf32> -> vector<2x64xf32>
    %c1 = arith.constant 1 : index
    %c0_81 = arith.constant 0 : index
    %c0_82 = arith.constant 0 : index
    %222 = vector.load %arg19[%c1, %c0_81, %c0_82] : memref<8x64x32xf32, #tpu.memory_space<vmem>>, vector<1x64x32xf32>
    %223 = vector.shape_cast %222 : vector<1x64x32xf32> to vector<64x32xf32>
    %cst_83 = arith.constant dense<0.000000e+00> : vector<2x32xf32>
    %224 = tpu.matmul %221, %223, %cst_83 {dimension_numbers = #tpu.dot_dimension_numbers<[1], [0], [0], [1], [0, 0, 1, 1], [], []>} : vector<2x64xf32>, vector<64x32xf32>, vector<2x32xf32> -> vector<2x32xf32>
    %225 = arith.addf %218, %224 : vector<2x32xf32>
    %226 = vector.extract_strided_slice %210 {offsets = [2, 0], sizes = [1, 64], strides = [1, 1]} : vector<16x64xf32> to vector<1x64xf32>
    %227 = vector.extract_strided_slice %210 {offsets = [10, 0], sizes = [1, 64], strides = [1, 1]} : vector<16x64xf32> to vector<1x64xf32>
    %228 = tpu.concatenate %226, %227 in 0 : vector<1x64xf32>, vector<1x64xf32> -> vector<2x64xf32>
    %c2 = arith.constant 2 : index
    %c0_84 = arith.constant 0 : index
    %c0_85 = arith.constant 0 : index
    %229 = vector.load %arg19[%c2, %c0_84, %c0_85] : memref<8x64x32xf32, #tpu.memory_space<vmem>>, vector<1x64x32xf32>
    %230 = vector.shape_cast %229 : vector<1x64x32xf32> to vector<64x32xf32>
    %cst_86 = arith.constant dense<0.000000e+00> : vector<2x32xf32>
    %231 = tpu.matmul %228, %230, %cst_86 {dimension_numbers = #tpu.dot_dimension_numbers<[1], [0], [0], [1], [0, 0, 1, 1], [], []>} : vector<2x64xf32>, vector<64x32xf32>, vector<2x32xf32> -> vector<2x32xf32>
    %232 = arith.addf %225, %231 : vector<2x32xf32>
    %233 = vector.extract_strided_slice %210 {offsets = [3, 0], sizes = [1, 64], strides = [1, 1]} : vector<16x64xf32> to vector<1x64xf32>
    %234 = vector.extract_strided_slice %210 {offsets = [11, 0], sizes = [1, 64], strides = [1, 1]} : vector<16x64xf32> to vector<1x64xf32>
    %235 = tpu.concatenate %233, %234 in 0 : vector<1x64xf32>, vector<1x64xf32> -> vector<2x64xf32>
    %c3 = arith.constant 3 : index
    %c0_87 = arith.constant 0 : index
    %c0_88 = arith.constant 0 : index
    %236 = vector.load %arg19[%c3, %c0_87, %c0_88] : memref<8x64x32xf32, #tpu.memory_space<vmem>>, vector<1x64x32xf32>
    %237 = vector.shape_cast %236 : vector<1x64x32xf32> to vector<64x32xf32>
    %cst_89 = arith.constant dense<0.000000e+00> : vector<2x32xf32>
    %238 = tpu.matmul %235, %237, %cst_89 {dimension_numbers = #tpu.dot_dimension_numbers<[1], [0], [0], [1], [0, 0, 1, 1], [], []>} : vector<2x64xf32>, vector<64x32xf32>, vector<2x32xf32> -> vector<2x32xf32>
    %239 = arith.addf %232, %238 : vector<2x32xf32>
    %240 = vector.extract_strided_slice %210 {offsets = [4, 0], sizes = [1, 64], strides = [1, 1]} : vector<16x64xf32> to vector<1x64xf32>
    %241 = vector.extract_strided_slice %210 {offsets = [12, 0], sizes = [1, 64], strides = [1, 1]} : vector<16x64xf32> to vector<1x64xf32>
    %242 = tpu.concatenate %240, %241 in 0 : vector<1x64xf32>, vector<1x64xf32> -> vector<2x64xf32>
    %c4 = arith.constant 4 : index
    %c0_90 = arith.constant 0 : index
    %c0_91 = arith.constant 0 : index
    %243 = vector.load %arg19[%c4, %c0_90, %c0_91] : memref<8x64x32xf32, #tpu.memory_space<vmem>>, vector<1x64x32xf32>
    %244 = vector.shape_cast %243 : vector<1x64x32xf32> to vector<64x32xf32>
    %cst_92 = arith.constant dense<0.000000e+00> : vector<2x32xf32>
    %245 = tpu.matmul %242, %244, %cst_92 {dimension_numbers = #tpu.dot_dimension_numbers<[1], [0], [0], [1], [0, 0, 1, 1], [], []>} : vector<2x64xf32>, vector<64x32xf32>, vector<2x32xf32> -> vector<2x32xf32>
    %246 = arith.addf %239, %245 : vector<2x32xf32>
    %247 = vector.extract_strided_slice %210 {offsets = [5, 0], sizes = [1, 64], strides = [1, 1]} : vector<16x64xf32> to vector<1x64xf32>
    %248 = vector.extract_strided_slice %210 {offsets = [13, 0], sizes = [1, 64], strides = [1, 1]} : vector<16x64xf32> to vector<1x64xf32>
    %249 = tpu.concatenate %247, %248 in 0 : vector<1x64xf32>, vector<1x64xf32> -> vector<2x64xf32>
    %c5 = arith.constant 5 : index
    %c0_93 = arith.constant 0 : index
    %c0_94 = arith.constant 0 : index
    %250 = vector.load %arg19[%c5, %c0_93, %c0_94] : memref<8x64x32xf32, #tpu.memory_space<vmem>>, vector<1x64x32xf32>
    %251 = vector.shape_cast %250 : vector<1x64x32xf32> to vector<64x32xf32>
    %cst_95 = arith.constant dense<0.000000e+00> : vector<2x32xf32>
    %252 = tpu.matmul %249, %251, %cst_95 {dimension_numbers = #tpu.dot_dimension_numbers<[1], [0], [0], [1], [0, 0, 1, 1], [], []>} : vector<2x64xf32>, vector<64x32xf32>, vector<2x32xf32> -> vector<2x32xf32>
    %253 = arith.addf %246, %252 : vector<2x32xf32>
    %254 = vector.extract_strided_slice %210 {offsets = [6, 0], sizes = [1, 64], strides = [1, 1]} : vector<16x64xf32> to vector<1x64xf32>
    %255 = vector.extract_strided_slice %210 {offsets = [14, 0], sizes = [1, 64], strides = [1, 1]} : vector<16x64xf32> to vector<1x64xf32>
    %256 = tpu.concatenate %254, %255 in 0 : vector<1x64xf32>, vector<1x64xf32> -> vector<2x64xf32>
    %c6 = arith.constant 6 : index
    %c0_96 = arith.constant 0 : index
    %c0_97 = arith.constant 0 : index
    %257 = vector.load %arg19[%c6, %c0_96, %c0_97] : memref<8x64x32xf32, #tpu.memory_space<vmem>>, vector<1x64x32xf32>
    %258 = vector.shape_cast %257 : vector<1x64x32xf32> to vector<64x32xf32>
    %cst_98 = arith.constant dense<0.000000e+00> : vector<2x32xf32>
    %259 = tpu.matmul %256, %258, %cst_98 {dimension_numbers = #tpu.dot_dimension_numbers<[1], [0], [0], [1], [0, 0, 1, 1], [], []>} : vector<2x64xf32>, vector<64x32xf32>, vector<2x32xf32> -> vector<2x32xf32>
    %260 = arith.addf %253, %259 : vector<2x32xf32>
    %261 = vector.extract_strided_slice %210 {offsets = [7, 0], sizes = [1, 64], strides = [1, 1]} : vector<16x64xf32> to vector<1x64xf32>
    %262 = vector.extract_strided_slice %210 {offsets = [15, 0], sizes = [1, 64], strides = [1, 1]} : vector<16x64xf32> to vector<1x64xf32>
    %263 = tpu.concatenate %261, %262 in 0 : vector<1x64xf32>, vector<1x64xf32> -> vector<2x64xf32>
    %c7 = arith.constant 7 : index
    %c0_99 = arith.constant 0 : index
    %c0_100 = arith.constant 0 : index
    %264 = vector.load %arg19[%c7, %c0_99, %c0_100] : memref<8x64x32xf32, #tpu.memory_space<vmem>>, vector<1x64x32xf32>
    %265 = vector.shape_cast %264 : vector<1x64x32xf32> to vector<64x32xf32>
    %cst_101 = arith.constant dense<0.000000e+00> : vector<2x32xf32>
    %266 = tpu.matmul %263, %265, %cst_101 {dimension_numbers = #tpu.dot_dimension_numbers<[1], [0], [0], [1], [0, 0, 1, 1], [], []>} : vector<2x64xf32>, vector<64x32xf32>, vector<2x32xf32> -> vector<2x32xf32>
    %267 = arith.addf %260, %266 : vector<2x32xf32>
    %c0_102 = arith.constant 0 : index
    %c0_103 = arith.constant 0 : index
    %268 = vector.load %arg20[%c0_102, %c0_103] : memref<1x32xf32, #tpu.memory_space<vmem>>, vector<1x32xf32>
    %269 = vector.broadcast %268 : vector<1x32xf32> to vector<2x32xf32>
    %270 = arith.addf %267, %269 : vector<2x32xf32>
    %cst_104 = arith.constant 0.000000e+00 : f32
    %271 = vector.broadcast %cst_104 : f32 to vector<2x32xf32>
    %272 = arith.maximumf %270, %271 : vector<2x32xf32>
    %c0_105 = arith.constant 0 : index
    %c0_106 = arith.constant 0 : index
    %273 = vector.load %arg21[%c0_105, %c0_106] : memref<32x32xf32, #tpu.memory_space<vmem>>, vector<32x32xf32>
    %cst_107 = arith.constant dense<0.000000e+00> : vector<2x32xf32>
    %274 = tpu.matmul %272, %273, %cst_107 {dimension_numbers = #tpu.dot_dimension_numbers<[1], [0], [0], [1], [0, 0, 1, 1], [], []>} : vector<2x32xf32>, vector<32x32xf32>, vector<2x32xf32> -> vector<2x32xf32>
    %c0_108 = arith.constant 0 : index
    %c0_109 = arith.constant 0 : index
    %275 = vector.load %arg22[%c0_108, %c0_109] : memref<1x32xf32, #tpu.memory_space<vmem>>, vector<1x32xf32>
    %276 = vector.broadcast %275 : vector<1x32xf32> to vector<2x32xf32>
    %277 = arith.addf %274, %276 : vector<2x32xf32>
    %cst_110 = arith.constant 0.000000e+00 : f32
    %278 = vector.broadcast %cst_110 : f32 to vector<2x32xf32>
    %279 = arith.maximumf %277, %278 : vector<2x32xf32>
    %c0_111 = arith.constant 0 : index
    %c0_112 = arith.constant 0 : index
    %280 = vector.load %arg23[%c0_111, %c0_112] : memref<2x32xf32, #tpu.memory_space<vmem>>, vector<2x32xf32>
    tpu.vector_store %arg23[%c0_111, %c0_112], %279 {strides = array<i32>} : memref<2x32xf32, #tpu.memory_space<vmem>>, vector<2x32xf32>,
    return
  }
}

</mosaic_0001>

<bundles_post_ra>
// kernel: vdcnn_forward.1
= control target key start
LH: loop header
LB: loop body
LE: loop exit
PB: predicated region body
PF: predicated region fallthrough
CT: control target
= control target key end

     0   :  { %s5606_s0 = inlined_call_operand.vmem [shape: f32[64,32], index: 0, kind: input, shape index: {}]   ;;  %s5607_s1 = inlined_call_operand.vmem [shape: f32[32,32], index: 1, kind: input, shape index: {}]   ;;  %s5608_s2 = inlined_call_operand.vmem [shape: f32[1,32], index: 2, kind: input, shape index: {}]   ;;  %s5609_s3 = inlined_call_operand.vmem [shape: f32[1,32], index: 3, kind: input, shape index: {}]   ;;  %s5610_s4 = inlined_call_operand.vmem [shape: f32[96,32], index: 4, kind: input, shape index: {}]   ;;  %s5611_s5 = inlined_call_operand.vmem [shape: f32[1,32], index: 5, kind: input, shape index: {}]   ;;  %s5612_s6 = inlined_call_operand.vmem [shape: f32[1,32], index: 6, kind: input, shape index: {}]   ;;  %s5613_s7 = inlined_call_operand.vmem [shape: f32[96,32], index: 7, kind: input, shape index: {}]   ;;  %s5614_s8 = inlined_call_operand.vmem [shape: f32[1,32], index: 8, kind: input, shape index: {}]   ;;  %s5615_s9 = inlined_call_operand.vmem [shape: f32[1,32], index: 9, kind: input, shape index: {}]   ;;  %s5616_s10 = inlined_call_operand.vmem [shape: f32[32,64], index: 10, kind: input, shape index: {}]   ;;  %s5617_s11 = inlined_call_operand.vmem [shape: f32[1,64], index: 11, kind: input, shape index: {}]   ;;  %s5618_s12 = inlined_call_operand.vmem [shape: f32[1,64], index: 12, kind: input, shape index: {}]   ;;  %s5619_s13 = inlined_call_operand.vmem [shape: f32[96,64], index: 13, kind: input, shape index: {}]   ;;  %s5620_s14 = inlined_call_operand.vmem [shape: f32[1,64], index: 14, kind: input, shape index: {}]   ;;  %s5621_s15 = inlined_call_operand.vmem [shape: f32[1,64], index: 15, kind: input, shape index: {}]   ;;  %s5622_s16 = inlined_call_operand.vmem [shape: f32[192,64], index: 16, kind: input, shape index: {}]   ;;  %s5623_s17 = inlined_call_operand.vmem [shape: f32[1,64], index: 17, kind: input, shape index: {}]   ;;  %s5624_s18 = inlined_call_operand.vmem [shape: f32[1,64], index: 18, kind: input, shape index: {}]   ;;  %s5625_s19 = inlined_call_operand.vmem [shape: f32[8,64,32], index: 19, kind: input, shape index: {}]   ;;  %s5626_s20 = inlined_call_operand.vmem [shape: f32[1,32], index: 20, kind: input, shape index: {}]   ;;  %s5627_s21 = inlined_call_operand.vmem [shape: f32[32,32], index: 21, kind: input, shape index: {}]   ;;  %s5628_s22 = inlined_call_operand.vmem [shape: f32[1,32], index: 22, kind: input, shape index: {}]   ;;  %s5629_s23 = inlined_call_operand.hbm [shape: f32[2,32], index: 23, kind: output, shape index: {}]  }
   0x1   :  { %5634 = sst [smem:[#allocation5_spill]] %s5606_s0 }
   0x2   :  { %5635 = sst [smem:[#allocation6_spill]] %s5607_s1 }
   0x3   :  { %5636 = sst [smem:[#allocation7_spill]] %s5608_s2 }
   0x4   :  { %5637 = sst [smem:[#allocation8_spill]] %s5609_s3 }
   0x5   :  { %5638 = sst [smem:[#allocation9_spill]] %s5610_s4 }
   0x6   :  { %5639 = sst [smem:[#allocation10_spill]] %s5611_s5 }
   0x7   :  { %5640 = sst [smem:[#allocation11_spill]] %s5612_s6 }
   0x8   :  { %5641 = sst [smem:[#allocation12_spill]] %s5613_s7 }
   0x9   :  { %s5642_s24 = sld [smem:[#allocation6_spill]]  ;;  %vm87_vm0 = vcmask 261120  }
   0xa   :  { %s5643_s2 = sld [smem:[#allocation5_spill]] }
   0xf   :  { %v86_v0 = vld [vmem:[%s5642_s24 + $0x18] sm:$0xff]  ;;  %v85_v1 = vld [vmem:[%s5642_s24 + $0x10] sm:$0xff]  ;;  %v84_v3 = vld [vmem:[%s5642_s24 + $0x8] sm:$0xff] }
  0x10   :  { %4009 = vmatprep.subr.mxu0 %v86_v0  ;;  %v75_v2 = vld [vmem:[%s5643_s2] sm:$0xff] }
  0x11   :  { %4010 = vmatpush3.msra.mxu0 %v86_v0  ;;  %4017 = vmatprep.mubr.msk.f32.mxu0 %vm87_vm0, %v75_v2  ;;  %v83_v4 = vld [vmem:[%s5642_s24] sm:$0xff] }
  0x12   :  { %4011 = vmatprep.subr.mxu0 %v85_v1 }
  0x13   :  { %4012 = vmatpush3.msra.mxu0 %v85_v1 }
  0x14   :  { %28 = vsyncpa [#allocation3], 0  ;;  %4013 = vmatprep.subr.mxu0 %v84_v3  ;;  %v76_v5 = vld [vmem:[%s5643_s2 + $0x8] sm:$0xff]  ;;  %v77_v6 = vld [vmem:[%s5643_s2 + $0x10] sm:$0xff]  ;;  %s5644_s0 = sld [smem:[#allocation9_spill]]  ;;  %vm263_vm1 = vcmask 1040384  }
  0x15   :  { %4014 = vmatpush3.msra.mxu0 %v84_v3  ;;  %v78_v7 = vld [vmem:[%s5643_s2 + $0x18] sm:$0xff]  ;;  %v79_v8 = vld [vmem:[%s5643_s2 + $0x20] sm:$0xff]  ;;  %v80_v9 = vld [vmem:[%s5643_s2 + $0x28] sm:$0xff]  ;;  %s5646_s26 = sld [smem:[#allocation8_spill]]  ;;  %vm292_vm2 = vcmask 1046528   ;;  %vm555_vm3 = vcmask 1045504  }
  0x16   :  { %4015 = vmatprep.subr.mxu0 %v83_v4  ;;  %v81_v10 = vld [vmem:[%s5643_s2 + $0x30] sm:$0xff]  ;;  %v82_v11 = vld [vmem:[%s5643_s2 + $0x38] sm:$0xff]  ;;  %s5645_s2 = sld [smem:[#allocation7_spill]]  ;;  %vm2135_vm8 = vcmask 523264   ;;  %vm4532_vm9 = vmmov 0   ;;  %vm2459_vm10 = vcmask 130048  }
  0x17   :  { %4016 = vmatpush3.msra.mxu0 %v83_v4  ;;  %s5647_s30 = sld [smem:[#allocation12_spill]]  ;;  %s4533_s24 = smov [#allocation2]   ;;  %vm3549_vm11 = vcmask 254976  }
  0x18   :  { %4018 = vmatmul.mubr.msk.f32.vlgmr.msra.gmra.mxu0 %vm87_vm0, %v76_v5  ;;  %s5648_s1 = sld [smem:[#allocation10_spill]] }
  0x19   :  { %4020 = vmatprep.mubr.msk.f32.mxu0 %vm87_vm0, %v77_v6  ;;  %s5649_s27 = sld [smem:[#allocation11_spill]] }
  0x1a   :  { %v250_v12 = vld [vmem:[%s5644_s0 + $0x18] sm:$0xff]  ;;  %v249_v13 = vld [vmem:[%s5644_s0 + $0x10] sm:$0xff]  ;;  %v248_v14 = vld [vmem:[%s5644_s0 + $0x8] sm:$0xff] }
  0x1b   :  { %4049 = vmatprep.subr.mxu0 %v250_v12  ;;  %v254_v15 = vld [vmem:[%s5644_s0 + $0x38] sm:$0xff]  ;;  %v247_v16 = vld [vmem:[%s5644_s0] sm:$0xff]  ;;  %v253_v17 = vld [vmem:[%s5644_s0 + $0x30] sm:$0xff] }
  0x1c   :  { %4021 = vmatmul.mubr.msk.f32.gmra.mxu0 %vm87_vm0, %v78_v7  ;;  %4029 = vmatprep.subr.mxu1 %v254_v15  ;;  %v252_v18 = vld [vmem:[%s5644_s0 + $0x28] sm:$0xff]  ;;  %v251_v19 = vld [vmem:[%s5644_s0 + $0x20] sm:$0xff]  ;;  %v4725_v20 = vld [vmem:[%s5644_s0 + $0x58] sm:$0xff] }
  0x1d   :  { %4023 = vmatprep.mubr.msk.f32.mxu0 %vm87_vm0, %v79_v8  ;;  %4050 = vmatpush3.msra.mxu0 %v250_v12  ;;  %v3573_v21 = vld [vmem:[%s5645_s2] ss:$0 sm:$0xff]  ;;  %v257_v2 = vld [vmem:[%s5644_s0 + $0x50] sm:$0xff]  ;;  %s3557_s2 = sshll.u32 %s4533_s24, 4  ;;  %s3558_s2 = int_to_ptr.vmem [resolvable:$true] %s3557_s2 }
  0x1e   :  { %4051 = vmatprep.subr.mxu0 %v249_v13  ;;  %4030 = vmatpush3.msra.mxu1 %v254_v15  ;;  %v3574_v24 = vld [vmem:[%s5646_s26] ss:$0 sm:$0xff]  ;;  %p4514_p1 = scmp.lt.s32.totalorder %s3558_s2, %s3558_s2 }
  0x1f   :  { %4052 = vmatpush3.msra.mxu0 %v249_v13  ;;  %4031 = vmatprep.subr.mxu1 %v253_v17  ;;  %v256_v13 = vld [vmem:[%s5644_s0 + $0x48] sm:$0xff] }
  0x20   :  { %4024 = vmatmul.mubr.msk.f32.gmra.mxu0 %vm87_vm0, %v80_v9  ;;  %4053 = vmatprep.subr.mxu0 %v248_v14 }
  0x21   :  { %4026 = vmatprep.mubr.msk.f32.mxu0 %vm87_vm0, %v81_v10  ;;  %4054 = vmatpush3.msra.mxu0 %v248_v14 }
  0x22   :  { %4055 = vmatprep.subr.mxu0 %v247_v16  ;;  %4032 = vmatpush3.msra.mxu1 %v253_v17 }
  0x23   :  { %4056 = vmatpush3.msra.mxu0 %v247_v16  ;;  %4033 = vmatprep.subr.mxu1 %v252_v18 }
  0x24   :  { %4027 = vmatmul.mubr.msk.f32.gmra.mxu0 %vm87_vm0, %v82_v11  ;;  %4034 = vmatpush3.msra.mxu1 %v252_v18 }
  0x25   :  { %4035 = vmatprep.subr.mxu1 %v251_v19 }
  0x26   :  { %4036 = vmatpush3.msra.mxu1 %v251_v19  ;;  %v255_v19 = vld [vmem:[%s5644_s0 + $0x40] sm:$0xff] }
  0x27   :  { %4069 = vmatprep.subr.mxu1 %v4725_v20 }
  0xd8   :  { %v4019_v22 = vpop.f32.mrf.mxu0 }
  0xd9   :  { %v225_v23 = vmul.f32 %v4019_v22, %v3573_v21 }
  0xda   :  { %v178_v25 = vpop.f32.mrf.mxu0 }
  0xdb   :  { %v224_v26 = vmul.f32 %v3573_v21, %v178_v25  ;;  %v4734_v27 = vadd.f32 %v3574_v24, %v225_v23 }
  0xdc   :  { %v4022_v28 = vpop.f32.mrf.mxu0 }
  0xdd   :  { %v4736_v29 = vadd.f32 %v3574_v24, %v224_v26  ;;  %v227_v30 = vmul.f32 %v4022_v28, %v3573_v21  ;;  %v265_v35 = vrot.slane %v4734_v27, 7 }
  0xde   :  { %v188_v31 = vpop.f32.mrf.mxu0 }
  0xdf   :  { %v264_v32 = vrot.slane %v4736_v29, 7  ;;  %v4739_v33 = vadd.f32 %v3574_v24, %v227_v30  ;;  %v226_v34 = vmul.f32 %v3573_v21, %v188_v31 }
  0xe0   :  { %v4025_v36 = vpop.f32.mrf.mxu0 }
  0xe1   :  { %v4742_v37 = vadd.f32 %v3574_v24, %v226_v34  ;;  %v229_v38 = vmul.f32 %v4025_v36, %v3573_v21  ;;  %v4745_v39 = vsel %vm263_vm1, 0.0, %v264_v32  ;;  %v269_v40 = vrot.slane %v4739_v33, 7 }
  0xe2   :  { %v198_v41 = vpop.f32.mrf.mxu0  ;;  %4057 = vmatprep.mubr.msk.f32.mxu0 %vm87_vm0, %v4745_v39  ;;  %v4751_v42 = vsel %vm263_vm1, %v264_v32, %v265_v35  ;;  %v293_v43 = vrot.slane %v4745_v39, 1 }
  0xe3   :  { %v267_v44 = vrot.slane %v4742_v37, 7  ;;  %v228_v45 = vmul.f32 %v3573_v21, %v198_v41  ;;  %4058 = vmatmul.mubr.msk.f32.vlgmr.msra.gmra.mxu0 %vm87_vm0, %v4751_v42  ;;  %v4757_v46 = vadd.f32 %v3574_v24, %v229_v38  ;;  %v294_v48 = vrot.slane %v4751_v42, 1 }
  0xe4   :  { %v4028_v47 = vpop.f32.mrf.mxu0  ;;  %v4766_v52 = vsel %vm263_vm1, %v269_v40, 0.0 }
  0xe5   :  { %v4760_v49 = vadd.f32 %v3574_v24, %v228_v45  ;;  %v231_v50 = vmul.f32 %v4028_v47, %v3573_v21  ;;  %v4763_v51 = vsel %vm263_vm1, %v265_v35, %v267_v44  ;;  %v295_v53 = vsel %vm292_vm2, %v293_v43, %v294_v48  ;;  %v743_v45 = vld [vmem:[%s5647_s30 + $0x10] sm:$0xff]  ;;  %v742_v47 = vld [vmem:[%s5647_s30 + $0x8] sm:$0xff] }
  0xe6   :  { %v208_v54 = vpop.f32.mrf.mxu0  ;;  %v296_v55 = vrot.slane %v4763_v51, 1  ;;  %4060 = vmatprep.mubr.msk.f32.mxu0 %vm87_vm0, %v4763_v51  ;;  %v4773_v56 = vsel %vm263_vm1, %v267_v44, %v269_v40  ;;  %4037 = vmatprep.mubr.msk.f32.mxu1 %vm87_vm0, %v295_v53  ;;  %v280_v61 = vrot.slane %v4757_v46, 7  ;;  %v300_v3 = vrot.slane %v4766_v52, 1  ;;  %v744_v44 = vld [vmem:[%s5647_s30 + $0x18] sm:$0xff]  ;;  %v745_v53 = vld [vmem:[%s5647_s30 + $0x20] sm:$0xff] }
  0xe7   :  { %v279_v57 = vrot.slane %v4760_v49, 7  ;;  %v4776_v58 = vadd.f32 %v3574_v24, %v231_v50  ;;  %v230_v59 = vmul.f32 %v3573_v21, %v208_v54  ;;  %v298_v60 = vrot.slane %v4773_v56, 1  ;;  %4061 = vmatmul.mubr.msk.f32.gmra.mxu0 %vm87_vm0, %v4773_v56  ;;  %v741_v50 = vld [vmem:[%s5647_s30] sm:$0xff]  ;;  %v4869_v54 = vld [vmem:[%s5647_s30 + $0x58] sm:$0xff] }
  0xe8   :  { %v297_v62 = vsel %vm292_vm2, %v294_v48, %v296_v55  ;;  %v557_v21 = vrot.slane %v4751_v42, 2  ;;  %v559_v23 = vrot.slane %v4763_v51, 2  ;;  %v561_v25 = vrot.slane %v4773_v56, 2  ;;  %v748_v48 = vld [vmem:[%s5647_s30 + $0x38] sm:$0xff]  ;;  %v747_v51 = vld [vmem:[%s5647_s30 + $0x30] sm:$0xff] }
  0xe9   :  { %v4784_v63 = vadd.f32 %v3574_v24, %v230_v59  ;;  %4038 = vmatmul.mubr.msk.f32.vlgmr.msra.gmra.mxu1 %vm87_vm0, %v297_v62  ;;  %v299_v0 = vsel %vm292_vm2, %v296_v55, %v298_v60  ;;  %v288_v1 = vsel %vm263_vm1, 0.0, %v279_v57  ;;  %v281_v5 = vsel %vm263_vm1, %v279_v57, %v280_v61  ;;  %4089 = vmatprep.subr.mxu0 %v748_v48 }
  0xea   :  { %4040 = vmatprep.mubr.msk.f32.mxu1 %vm87_vm0, %v299_v0  ;;  %v304_v4 = vrot.slane %v288_v1, 1  ;;  %4063 = vmatprep.mubr.msk.f32.mxu0 %vm87_vm0, %v288_v1  ;;  %v284_v6 = vrot.slane %v4776_v58, 7  ;;  %v305_v8 = vrot.slane %v281_v5, 1  ;;  %v301_v9 = vsel %vm292_vm2, %v298_v60, %v300_v3 }
  0xeb   :  { %v282_v7 = vrot.slane %v4784_v63, 7  ;;  %4064 = vmatmul.mubr.msk.f32.gmra.mxu0 %vm87_vm0, %v281_v5  ;;  %4070 = vmatpush3.msra.mxu1 %v4725_v20  ;;  %v556_v20 = vrot.slane %v4745_v39, 2  ;;  %v560_v28 = vsel %vm555_vm3, %v557_v21, %v559_v23  ;;  %v565_v30 = vrot.slane %v288_v1, 2 }
  0xec   :  { %4071 = vmatprep.subr.mxu1 %v257_v2  ;;  %v306_v10 = vsel %vm292_vm2, %v304_v4, %v305_v8  ;;  %v289_v16 = vsel %vm263_vm1, %v284_v6, 0.0  ;;  %v566_v31 = vrot.slane %v281_v5, 2  ;;  %v562_v32 = vsel %vm555_vm3, %v559_v23, %v561_v25  ;;  %4090 = vmatpush3.msra.mxu0 %v748_v48 }
  0xed   :  { %4041 = vmatmul.mubr.msk.f32.gmra.mxu1 %vm87_vm0, %v301_v9  ;;  %v283_v11 = vsel %vm263_vm1, %v280_v61, %v282_v7  ;;  %v285_v12 = vsel %vm263_vm1, %v282_v7, %v284_v6  ;;  %v311_v22 = vrot.slane %v289_v16, 1  ;;  %v558_v26 = vsel %vm555_vm3, %v556_v20, %v557_v21  ;;  %4091 = vmatprep.subr.mxu0 %v747_v51 }
  0xee   :  { %4043 = vmatprep.mubr.msk.f32.mxu1 %vm87_vm0, %v306_v10  ;;  %v307_v14 = vrot.slane %v283_v11, 1  ;;  %4066 = vmatprep.mubr.msk.f32.mxu0 %vm87_vm0, %v283_v11  ;;  %v309_v15 = vrot.slane %v285_v12, 1  ;;  %v563_v34 = vrot.slane %v4766_v52, 2  ;;  %v568_v35 = vrot.slane %v283_v11, 2  ;;  %v746_v52 = vld [vmem:[%s5647_s30 + $0x28] sm:$0xff] }
  0xef   :  { %4067 = vmatmul.mubr.msk.f32.gmra.mxu0 %vm87_vm0, %v285_v12  ;;  %4072 = vmatpush3.msra.mxu1 %v257_v2  ;;  %v570_v38 = vrot.slane %v285_v12, 2  ;;  %v567_v39 = vsel %vm555_vm3, %v565_v30, %v566_v31  ;;  %v572_v42 = vrot.slane %v289_v16, 2  ;;  %v4878_v11 = vld [vmem:[%s5649_s27] ss:$0 sm:$0xff] }
  0xf0   :  { %v308_v17 = vsel %vm292_vm2, %v305_v8, %v307_v14  ;;  %v310_v18 = vsel %vm292_vm2, %v307_v14, %v309_v15  ;;  %4073 = vmatprep.subr.mxu1 %v256_v13  ;;  %v312_v24 = vsel %vm292_vm2, %v309_v15, %v311_v22  ;;  %v564_v36 = vsel %vm555_vm3, %v561_v25, %v563_v34  ;;  %v3599_v8 = vld [vmem:[%s5648_s1] ss:$0 sm:$0xff] }
  0xf1   :  { %4044 = vmatmul.mubr.msk.f32.gmra.mxu1 %vm87_vm0, %v308_v17  ;;  %v569_v40 = vsel %vm555_vm3, %v566_v31, %v568_v35  ;;  %v571_v41 = vsel %vm555_vm3, %v568_v35, %v570_v38  ;;  %v573_v43 = vsel %vm555_vm3, %v570_v38, %v572_v42  ;;  %4092 = vmatpush3.msra.mxu0 %v747_v51 }
  0xf2   :  { %4046 = vmatprep.mubr.msk.f32.mxu1 %vm87_vm0, %v310_v18  ;;  %4074 = vmatpush3.msra.mxu1 %v256_v13 }
  0xf3   :  { %4075 = vmatprep.subr.mxu1 %v255_v19  ;;  %4093 = vmatprep.subr.mxu0 %v746_v52 }
  0xf4   :  { %4076 = vmatpush3.msra.mxu1 %v255_v19  ;;  %4094 = vmatpush3.msra.mxu0 %v746_v52 }
  0xf5   :  { %4047 = vmatmul.mubr.msk.f32.gmra.mxu1 %vm87_vm0, %v312_v24  ;;  %4109 = vmatprep.subr.mxu1 %v744_v44 }
  0xf6   :  { %4077 = vmatprep.mubr.msk.f32.mxu1 %vm87_vm0, %v558_v26  ;;  %4095 = vmatprep.subr.mxu0 %v745_v53 }
  0xf7   :  { %4096 = vmatpush3.msra.mxu0 %v745_v53 }
  0xf8   :  { %4129 = vmatprep.subr.mxu0 %v4869_v54 }
  0xf9   :  { %4078 = vmatmul.mubr.msk.f32.vlgmr.msra.gmra.mxu1 %vm87_vm0, %v560_v28 }
  0xfa   :  { %4080 = vmatprep.mubr.msk.f32.mxu1 %vm87_vm0, %v562_v32  ;;  %4110 = vmatpush3.msra.mxu1 %v744_v44 }
  0xfb   :  { %4111 = vmatprep.subr.mxu1 %v743_v45 }
  0xfc   :  { %4112 = vmatpush3.msra.mxu1 %v743_v45 }
  0xfd   :  { %4081 = vmatmul.mubr.msk.f32.gmra.mxu1 %vm87_vm0, %v564_v36  ;;  %4113 = vmatprep.subr.mxu1 %v742_v47 }
  0xfe   :  { %4083 = vmatprep.mubr.msk.f32.mxu1 %vm87_vm0, %v567_v39  ;;  %4114 = vmatpush3.msra.mxu1 %v742_v47 }
  0xff   :  { %4115 = vmatprep.subr.mxu1 %v741_v50 }
 0x100   :  { %4116 = vmatpush3.msra.mxu1 %v741_v50 }
 0x101   :  { %4084 = vmatmul.mubr.msk.f32.gmra.mxu1 %vm87_vm0, %v569_v40 }
 0x102   :  { %4086 = vmatprep.mubr.msk.f32.mxu1 %vm87_vm0, %v571_v41 }
 0x105   :  { %4087 = vmatmul.mubr.msk.f32.gmra.mxu1 %vm87_vm0, %v573_v43 }
 0x1a3   :  { %v4059_v55 = vpop.f32.mrf.mxu0 }
 0x1a5   :  { %v516_v59 = vpop.f32.mrf.mxu0 }
 0x1a7   :  { %v4062_v62 = vpop.f32.mrf.mxu0 }
 0x1a9   :  { %v4039_v56 = vpop.f32.mrf.mxu1  ;;  %v526_v2 = vpop.f32.mrf.mxu0 }
 0x1aa   :  { %v522_v5 = vadd.f32 %v4059_v55, %v4039_v56 }
 0x1ab   :  { %v395_v57 = vpop.f32.mrf.mxu1  ;;  %v4065_v6 = vpop.f32.mrf.mxu0 }
 0x1ac   :  { %v517_v9 = vadd.f32 %v516_v59, %v395_v57 }
 0x1ad   :  { %v4042_v60 = vpop.f32.mrf.mxu1  ;;  %v536_v16 = vpop.f32.mrf.mxu0 }
 0x1ae   :  { %v532_v13 = vadd.f32 %v4062_v62, %v4042_v60 }
 0x1af   :  { %v405_v61 = vpop.f32.mrf.mxu1  ;;  %v4068_v26 = vpop.f32.mrf.mxu0 }
 0x1b0   :  { %v527_v18 = vadd.f32 %v526_v2, %v405_v61 }
 0x1b1   :  { %v4045_v0 = vpop.f32.mrf.mxu1  ;;  %v546_v45 = vpop.f32.mrf.mxu0 }
 0x1b2   :  { %v542_v28 = vadd.f32 %v4065_v6, %v4045_v0 }
 0x1b3   :  { %v415_v1 = vpop.f32.mrf.mxu1 }
 0x1b4   :  { %v537_v32 = vadd.f32 %v536_v16, %v415_v1 }
 0x1b5   :  { %v4048_v3 = vpop.f32.mrf.mxu1 }
 0x1b6   :  { %v552_v38 = vadd.f32 %v4068_v26, %v4048_v3 }
 0x1b7   :  { %v425_v4 = vpop.f32.mrf.mxu1 }
 0x1b8   :  { %v547_v51 = vadd.f32 %v546_v45, %v425_v4 }
 0x1b9   :  { %v4079_v7 = vpop.f32.mrf.mxu1 }
 0x1ba   :  { %v696_v10 = vadd.f32 %v4079_v7, %v522_v5 }
 0x1bb   :  { %v656_v12 = vpop.f32.mrf.mxu1 }
 0x1bc   :  { %v711_v14 = vmul.f32 %v3599_v8, %v696_v10  ;;  %v695_v15 = vadd.f32 %v656_v12, %v517_v9 }
 0x1bd   :  { %v4082_v17 = vpop.f32.mrf.mxu1 }
 0x1be   :  { %v726_v19 = vadd.f32 %v4878_v11, %v711_v14  ;;  %v710_v20 = vmul.f32 %v3599_v8, %v695_v15  ;;  %v698_v21 = vadd.f32 %v4082_v17, %v532_v13 }
 0x1bf   :  { %v666_v22 = vpop.f32.mrf.mxu1 }
 0x1c0   :  { %v725_v23 = vadd.f32 %v4878_v11, %v710_v20  ;;  %v713_v24 = vmul.f32 %v3599_v8, %v698_v21  ;;  %v697_v25 = vadd.f32 %v666_v22, %v527_v18  ;;  %v734_v30 = vmax.f32 %v726_v19, 0.0  ;;  %v751_v21 = vld [vmem:[%s5647_s30 + $0x50] sm:$0xff] }
 0x1c1   :  { %v4085_v31 = vpop.f32.mrf.mxu1 }
 0x1c2   :  { %v733_v34 = vmax.f32 %v725_v23, 0.0  ;;  %v728_v35 = vadd.f32 %v4878_v11, %v713_v24  ;;  %v712_v36 = vmul.f32 %v3599_v8, %v697_v25  ;;  %v700_v39 = vadd.f32 %v4085_v31, %v542_v28  ;;  %v750_v28 = vld [vmem:[%s5647_s30 + $0x48] sm:$0xff] }
 0x1c3   :  { %v676_v40 = vpop.f32.mrf.mxu1  ;;  %v758_v47 = vrot.slane %v734_v30, 7 }
 0x1c4   :  { %v736_v41 = vmax.f32 %v728_v35, 0.0  ;;  %v727_v42 = vadd.f32 %v4878_v11, %v712_v36  ;;  %v699_v43 = vadd.f32 %v676_v40, %v537_v32  ;;  %v757_v44 = vrot.slane %v733_v34, 7  ;;  %v749_v35 = vld [vmem:[%s5647_s30 + $0x40] sm:$0xff] }
 0x1c5   :  { %v715_v48 = vmul.f32 %v3599_v8, %v700_v39  ;;  %v4088_v50 = vpop.f32.mrf.mxu1 }
 0x1c6   :  { %v735_v52 = vmax.f32 %v727_v42, 0.0  ;;  %v714_v53 = vmul.f32 %v3599_v8, %v699_v43  ;;  %v702_v55 = vadd.f32 %v4088_v50, %v552_v38  ;;  %v762_v56 = vrot.slane %v736_v41, 7 }
 0x1c7   :  { %v730_v57 = vadd.f32 %v4878_v11, %v715_v48  ;;  %v686_v59 = vpop.f32.mrf.mxu1  ;;  %v4886_v60 = vsel %vm263_vm1, 0.0, %v757_v44  ;;  %v4889_v61 = vsel %vm263_vm1, %v757_v44, %v758_v47 }
 0x1c8   :  { %v760_v62 = vrot.slane %v735_v52, 7  ;;  %v729_v0 = vadd.f32 %v4878_v11, %v714_v53  ;;  %v717_v1 = vmul.f32 %v3599_v8, %v702_v55  ;;  %4117 = vmatprep.mubr.msk.f32.mxu1 %vm87_vm0, %v4886_v60  ;;  %v701_v3 = vadd.f32 %v686_v59, %v547_v51 }
 0x1c9   :  { %v738_v2 = vmax.f32 %v730_v57, 0.0  ;;  %v785_v4 = vrot.slane %v4886_v60, 1  ;;  %4118 = vmatmul.mubr.msk.f32.vlgmr.msra.gmra.mxu1 %vm87_vm0, %v4889_v61  ;;  %v786_v7 = vrot.slane %v4889_v61, 1  ;;  %v4903_v10 = vsel %vm263_vm1, %v762_v56, 0.0 }
 0x1ca   :  { %v737_v5 = vmax.f32 %v729_v0, 0.0  ;;  %v732_v6 = vadd.f32 %v4878_v11, %v717_v1  ;;  %v4900_v9 = vsel %vm263_vm1, %v758_v47, %v760_v62  ;;  %v716_v12 = vmul.f32 %v3599_v8, %v701_v3 }
 0x1cb   :  { %v788_v13 = vrot.slane %v4900_v9, 1  ;;  %4120 = vmatprep.mubr.msk.f32.mxu1 %vm87_vm0, %v4900_v9  ;;  %v773_v14 = vrot.slane %v738_v2, 7  ;;  %v787_v15 = vsel %vm292_vm2, %v785_v4, %v786_v7  ;;  %v4910_v16 = vsel %vm263_vm1, %v760_v62, %v762_v56 }
 0x1cc   :  { %v772_v17 = vrot.slane %v737_v5, 7  ;;  %v740_v18 = vmax.f32 %v732_v6, 0.0  ;;  %v731_v19 = vadd.f32 %v4878_v11, %v716_v12  ;;  %4097 = vmatprep.mubr.msk.f32.mxu0 %vm87_vm0, %v787_v15  ;;  %v790_v20 = vrot.slane %v4910_v16, 1  ;;  %v1599_v15 = vld [vmem:[%s5616_s10 + $0x10] sm:$0xff] }
 0x1cd   :  { %4121 = vmatmul.mubr.msk.f32.gmra.mxu1 %vm87_vm0, %v4910_v16  ;;  %v789_v8 = vsel %vm292_vm2, %v786_v7, %v788_v13  ;;  %v792_v26 = vrot.slane %v4903_v10, 1  ;;  %v1047_v44 = vrot.slane %v4886_v60, 2  ;;  %v1048_v45 = vrot.slane %v4889_v61, 2 }
 0x1ce   :  { %4098 = vmatmul.mubr.msk.f32.vlgmr.msra.gmra.mxu0 %vm87_vm0, %v789_v8  ;;  %v781_v22 = vsel %vm263_vm1, 0.0, %v772_v17  ;;  %v774_v23 = vsel %vm263_vm1, %v772_v17, %v773_v14  ;;  %v739_v11 = vmax.f32 %v731_v19, 0.0  ;;  %v791_v24 = vsel %vm292_vm2, %v788_v13, %v790_v20 }
 0x1cf   :  { %v796_v25 = vrot.slane %v781_v22, 1  ;;  %4123 = vmatprep.mubr.msk.f32.mxu1 %vm87_vm0, %v781_v22  ;;  %4130 = vmatpush3.msra.mxu0 %v4869_v54  ;;  %v797_v30 = vrot.slane %v774_v23, 1  ;;  %v777_v31 = vrot.slane %v740_v18, 7  ;;  %v793_v34 = vsel %vm292_vm2, %v790_v20, %v792_v26 }
 0x1d0   :  { %4100 = vmatprep.mubr.msk.f32.mxu0 %vm87_vm0, %v791_v24  ;;  %4131 = vmatprep.subr.mxu0 %v751_v21  ;;  %v775_v32 = vrot.slane %v739_v11, 7  ;;  %v1050_v48 = vrot.slane %v4900_v9, 2  ;;  %v1052_v51 = vrot.slane %v4910_v16, 2  ;;  %v1049_v52 = vsel %vm555_vm3, %v1047_v44, %v1048_v45  ;;  %v3626_v44 = vld [vmem:[%s5615_s9] ss:$0 sm:$0xff] }
 0x1d1   :  { %4124 = vmatmul.mubr.msk.f32.gmra.mxu1 %vm87_vm0, %v774_v23  ;;  %4132 = vmatpush3.msra.mxu0 %v751_v21  ;;  %v798_v54 = vsel %vm292_vm2, %v796_v25, %v797_v30  ;;  %v782_v41 = vsel %vm263_vm1, %v777_v31, 0.0  ;;  %v1056_v55 = vrot.slane %v781_v22, 2  ;;  %v1057_v56 = vrot.slane %v774_v23, 2 }
 0x1d2   :  { %4101 = vmatmul.mubr.msk.f32.gmra.mxu0 %vm87_vm0, %v793_v34  ;;  %4133 = vmatprep.subr.mxu0 %v750_v28  ;;  %v776_v36 = vsel %vm263_vm1, %v773_v14, %v775_v32  ;;  %v778_v38 = vsel %vm263_vm1, %v775_v32, %v777_v31  ;;  %v803_v47 = vrot.slane %v782_v41, 1  ;;  %v1051_v53 = vsel %vm555_vm3, %v1048_v45, %v1050_v48 }
 0x1d3   :  { %4103 = vmatprep.mubr.msk.f32.mxu0 %vm87_vm0, %v798_v54  ;;  %4134 = vmatpush3.msra.mxu0 %v750_v28  ;;  %v799_v39 = vrot.slane %v776_v36, 1  ;;  %v801_v40 = vrot.slane %v778_v38, 1  ;;  %v1053_v57 = vsel %vm555_vm3, %v1050_v48, %v1052_v51  ;;  %v1054_v59 = vrot.slane %v4903_v10, 2  ;;  %v3625_v54 = vld [vmem:[%s5614_s8] ss:$0 sm:$0xff] }
 0x1d4   :  { %4126 = vmatprep.mubr.msk.f32.mxu1 %vm87_vm0, %v776_v36  ;;  %4135 = vmatprep.subr.mxu0 %v749_v35  ;;  %v1059_v60 = vrot.slane %v776_v36, 2  ;;  %v1061_v62 = vrot.slane %v778_v38, 2  ;;  %v1058_v0 = vsel %vm555_vm3, %v1056_v55, %v1057_v56  ;;  %v1063_v3 = vrot.slane %v782_v41, 2 }
 0x1d5   :  { %4127 = vmatmul.mubr.msk.f32.gmra.mxu1 %vm87_vm0, %v778_v38  ;;  %4136 = vmatpush3.msra.mxu0 %v749_v35  ;;  %v800_v42 = vsel %vm292_vm2, %v797_v30, %v799_v39  ;;  %v802_v43 = vsel %vm292_vm2, %v799_v39, %v801_v40  ;;  %v804_v50 = vsel %vm292_vm2, %v801_v40, %v803_v47  ;;  %v1240_v5 = vlaneseq }
 0x1d6   :  { %4104 = vmatmul.mubr.msk.f32.gmra.mxu0 %vm87_vm0, %v800_v42  ;;  %v1055_v61 = vsel %vm555_vm3, %v1052_v51, %v1054_v59  ;;  %v1060_v1 = vsel %vm555_vm3, %v1057_v56, %v1059_v60  ;;  %v1062_v2 = vsel %vm555_vm3, %v1059_v60, %v1061_v62  ;;  %v1064_v4 = vsel %vm555_vm3, %v1061_v62, %v1063_v3 }
 0x1d7   :  { %4106 = vmatprep.mubr.msk.f32.mxu0 %vm87_vm0, %v802_v43  ;;  %v1241_v6 = vshrl.u32 %v1240_v5, 7  ;;  %v4972_v7 = vand.u32 127, %v1240_v5  ;;  %v4531_v13 = vmov 0.0  }
 0x1d9   :  { %v1242_v9 = vadd.s32 8, %v1241_v6  ;;  %v1245_v10 = vmul.u32 2, %v1241_v6 }
 0x1da   :  { %4107 = vmatmul.mubr.msk.f32.gmra.mxu0 %vm87_vm0, %v804_v50 }
 0x1db   :  { %4137 = vmatprep.mubr.msk.f32.mxu0 %vm87_vm0, %v1049_v52  ;;  %v1246_v12 = vmul.u32 2, %v1242_v9  ;;  %vm1247_vm4 = vcmp.eq.s32.totalorder %v4972_v7, %v1245_v10  ;;  %v4987_v16 = vadd.s32 1, %v1245_v10 }
 0x1dc   :  { %v4976_v14 = vsel %vm1247_vm4, 1.0, %v4531_v13 }
 0x1dd   :  { %4157 = vmatprep.mubr.msk.f32.mxu1 %vm87_vm0, %v4976_v14  ;;  %vm4981_vm5 = vcmp.eq.s32.totalorder %v4972_v7, %v1246_v12  ;;  %v4989_v17 = vadd.s32 1, %v1246_v12  ;;  %vm1255_vm6 = vcmp.eq.s32.totalorder %v4972_v7, %v4987_v16  ;;  %v1598_v16 = vld [vmem:[%s5616_s10 + $0x8] sm:$0xff] }
 0x1de   :  { %4138 = vmatmul.mubr.msk.f32.vlgmr.msra.gmra.mxu0 %vm87_vm0, %v1051_v53 }
 0x1df   :  { %4140 = vmatprep.mubr.msk.f32.mxu0 %vm87_vm0, %v1053_v57  ;;  %vm1256_vm7 = vcmp.eq.s32.totalorder %v4972_v7, %v4989_v17  ;;  %v1600_v7 = vld [vmem:[%s5616_s10 + $0x18] sm:$0xff] }
 0x1e0   :  { %v1727_v17 = vld [vmem:[%s5619_s13 + $0x38] sm:$0xff] }
 0x1e2   :  { %4141 = vmatmul.mubr.msk.f32.gmra.mxu0 %vm87_vm0, %v1055_v61 }
 0x1e3   :  { %4143 = vmatprep.mubr.msk.f32.mxu0 %vm87_vm0, %v1058_v0 }
 0x1e6   :  { %4144 = vmatmul.mubr.msk.f32.gmra.mxu0 %vm87_vm0, %v1060_v1 }
 0x1e7   :  { %4146 = vmatprep.mubr.msk.f32.mxu0 %vm87_vm0, %v1062_v2 }
 0x1ea   :  { %4147 = vmatmul.mubr.msk.f32.gmra.mxu0 %vm87_vm0, %v1064_v4 }
 0x1eb   :  { %4179 = vmatprep.mubr.msk.f32.mxu0 %vm87_vm0, %v4976_v14 }
 0x289   :  { %v4119_v18 = vpop.f32.mrf.mxu1 }
 0x28b   :  { %v1008_v8 = vpop.f32.mrf.mxu1 }
 0x28d   :  { %v4122_v23 = vpop.f32.mrf.mxu1 }
 0x28e   :  { %v4099_v19 = vpop.f32.mrf.mxu0 }
 0x28f   :  { %v1018_v25 = vpop.f32.mrf.mxu1  ;;  %v1014_v30 = vadd.f32 %v4119_v18, %v4099_v19 }
 0x290   :  { %v887_v20 = vpop.f32.mrf.mxu0 }
 0x291   :  { %v4125_v31 = vpop.f32.mrf.mxu1  ;;  %v1009_v34 = vadd.f32 %v1008_v8, %v887_v20 }
 0x292   :  { %v4102_v21 = vpop.f32.mrf.mxu0 }
 0x293   :  { %v1024_v38 = vadd.f32 %v4122_v23, %v4102_v21  ;;  %v1028_v39 = vpop.f32.mrf.mxu1 }
 0x294   :  { %v897_v22 = vpop.f32.mrf.mxu0 }
 0x295   :  { %v1019_v43 = vadd.f32 %v1018_v25, %v897_v22  ;;  %v4128_v50 = vpop.f32.mrf.mxu1 }
 0x296   :  { %v4105_v11 = vpop.f32.mrf.mxu0 }
 0x297   :  { %v1034_v53 = vadd.f32 %v4125_v31, %v4105_v11  ;;  %v1038_v1 = vpop.f32.mrf.mxu1 }
 0x298   :  { %v907_v24 = vpop.f32.mrf.mxu0 }
 0x299   :  { %v1029_v57 = vadd.f32 %v1028_v39, %v907_v24  ;;  %v1597_v39 = vld [vmem:[%s5616_s10] sm:$0xff] }
 0x29a   :  { %v4108_v26 = vpop.f32.mrf.mxu0 }
 0x29b   :  { %v1044_v2 = vadd.f32 %v4128_v50, %v4108_v26 }
 0x29c   :  { %v917_v28 = vpop.f32.mrf.mxu0 }
 0x29d   :  { %v1039_v6 = vadd.f32 %v1038_v1, %v917_v28 }
 0x29e   :  { %v4139_v32 = vpop.f32.mrf.mxu0 }
 0x29f   :  { %v1187_v35 = vadd.f32 %v4139_v32, %v1014_v30 }
 0x2a0   :  { %v1147_v36 = vpop.f32.mrf.mxu0 }
 0x2a1   :  { %v1186_v40 = vadd.f32 %v1147_v36, %v1009_v34  ;;  %v1202_v41 = vmul.f32 %v3625_v54, %v1187_v35  ;;  %v3628_v35 = vsel %vm4981_vm5, 1.0, %v4531_v13 }
 0x2a2   :  { %v4142_v42 = vpop.f32.mrf.mxu0 }
 0x2a3   :  { %v1189_v45 = vadd.f32 %v4142_v42, %v1024_v38  ;;  %v1201_v47 = vmul.f32 %v3625_v54, %v1186_v40  ;;  %v1217_v55 = vadd.f32 %v3626_v44, %v1202_v41  ;;  %v1726_v38 = vld [vmem:[%s5619_s13 + $0x30] sm:$0xff]  ;;  %v1725_v40 = vld [vmem:[%s5619_s13 + $0x28] sm:$0xff]  ;;  %v1724_v41 = vld [vmem:[%s5619_s13 + $0x20] sm:$0xff] }
 0x2a4   :  { %v1157_v48 = vpop.f32.mrf.mxu0  ;;  %v1723_v42 = vld [vmem:[%s5619_s13 + $0x18] sm:$0xff] }
 0x2a5   :  { %v1204_v51 = vmul.f32 %v3625_v54, %v1189_v45  ;;  %v1188_v52 = vadd.f32 %v1157_v48, %v1019_v43  ;;  %v1216_v61 = vadd.f32 %v3626_v44, %v1201_v47  ;;  %v1225_v9 = vadd.f32 %v1217_v55, %v4734_v27  ;;  %v1731_v43 = vld [vmem:[%s5619_s13 + $0x58] sm:$0xff] }
 0x2a6   :  { %v4145_v56 = vpop.f32.mrf.mxu0 }
 0x2a7   :  { %v1219_v59 = vadd.f32 %v3626_v44, %v1204_v51  ;;  %v1203_v60 = vmul.f32 %v3625_v54, %v1188_v52  ;;  %v1191_v62 = vadd.f32 %v4145_v56, %v1034_v53  ;;  %v1224_v8 = vadd.f32 %v1216_v61, %v4736_v29 }
 0x2a8   :  { %v1167_v0 = vpop.f32.mrf.mxu0 }
 0x2a9   :  { %v1227_v3 = vadd.f32 %v1219_v59, %v4739_v33  ;;  %v1218_v4 = vadd.f32 %v3626_v44, %v1203_v60  ;;  %v1190_v5 = vadd.f32 %v1167_v0, %v1029_v57  ;;  %v1206_v19 = vmul.f32 %v3625_v54, %v1191_v62 }
 0x2aa   :  { %v4148_v10 = vpop.f32.mrf.mxu0  ;;  %v1233_v33 = vmax.f32 %v1225_v9, 0.0  ;;  %v1232_v27 = vmax.f32 %v1224_v8, 0.0 }
 0x2ab   :  { %v1235_v12 = vmax.f32 %v1227_v3, 0.0  ;;  %v1226_v18 = vadd.f32 %v1218_v4, %v4742_v37  ;;  %v1193_v20 = vadd.f32 %v4148_v10, %v1044_v2  ;;  %v1205_v23 = vmul.f32 %v3625_v54, %v1190_v5  ;;  %v1722_v2 = vld [vmem:[%s5619_s13 + $0x10] sm:$0xff]  ;;  %v1721_v10 = vld [vmem:[%s5619_s13 + $0x8] sm:$0xff] }
 0x2ac   :  { %v1177_v21 = vpop.f32.mrf.mxu0  ;;  %v1221_v25 = vadd.f32 %v3626_v44, %v1206_v19 }
 0x2ad   :  { %v1234_v22 = vmax.f32 %v1226_v18, 0.0  ;;  %v1208_v11 = vmul.f32 %v3625_v54, %v1193_v20  ;;  %v1192_v24 = vadd.f32 %v1177_v21, %v1039_v6  ;;  %4149 = vmatprep.subr.mxu1 %v1235_v12  ;;  %v1220_v30 = vadd.f32 %v3626_v44, %v1205_v23 }
 0x2ae   :  { %4150 = vmatpush3.msra.mxu1 %v1235_v12  ;;  %v1229_v29 = vadd.f32 %v1221_v25, %v4757_v46 }
 0x2af   :  { %v1223_v26 = vadd.f32 %v3626_v44, %v1208_v11  ;;  %v1207_v28 = vmul.f32 %v3625_v54, %v1192_v24  ;;  %4151 = vmatprep.subr.mxu1 %v1234_v22  ;;  %v1228_v54 = vadd.f32 %v1220_v30, %v4760_v49  ;;  %v3630_v49 = vsel %vm1256_vm7, 1.0, %v4531_v13 }
 0x2b0   :  { %4152 = vmatpush3.msra.mxu1 %v1234_v22 }
 0x2b1   :  { %v1231_v37 = vadd.f32 %v1223_v26, %v4776_v58  ;;  %v1222_v31 = vadd.f32 %v3626_v44, %v1207_v28  ;;  %4153 = vmatprep.subr.mxu1 %v1233_v33  ;;  %v1237_v58 = vmax.f32 %v1229_v29, 0.0  ;;  %v1236_v46 = vmax.f32 %v1228_v54, 0.0  ;;  %v1730_v28 = vld [vmem:[%s5619_s13 + $0x50] sm:$0xff] }
 0x2b2   :  { %4154 = vmatpush3.msra.mxu1 %v1233_v33 }
 0x2b3   :  { %v1239_v32 = vmax.f32 %v1231_v37, 0.0  ;;  %v1230_v34 = vadd.f32 %v1222_v31, %v4784_v63  ;;  %4155 = vmatprep.subr.mxu1 %v1232_v27  ;;  %v5017_v63 = vsel %vm1255_vm6, 1.0, %v4531_v13  ;;  %v1729_v37 = vld [vmem:[%s5619_s13 + $0x48] sm:$0xff] }
 0x2b4   :  { %4156 = vmatpush3.msra.mxu1 %v1232_v27 }
 0x2b5   :  { %v1238_v36 = vmax.f32 %v1230_v34, 0.0  ;;  %4160 = vmatprep.subr.mxu1 %v1235_v12  ;;  %4171 = vmatprep.subr.mxu0 %v1239_v32 }
 0x2b6   :  { %4158 = vmatmul.mubr.msk.f32.vlgmr.msra.gmra.mxu1 %vm87_vm0, %v3628_v35  ;;  %4172 = vmatpush3.msra.mxu0 %v1239_v32 }
 0x2b7   :  { %4161 = vmatpush3.msra.mxu1 %v1235_v12  ;;  %4173 = vmatprep.subr.mxu0 %v1238_v36 }
 0x2b8   :  { %4162 = vmatprep.subr.mxu1 %v1234_v22  ;;  %4174 = vmatpush3.msra.mxu0 %v1238_v36 }
 0x2b9   :  { %4163 = vmatpush3.msra.mxu1 %v1234_v22  ;;  %4175 = vmatprep.subr.mxu0 %v1237_v58  ;;  %v1720_v22 = vld [vmem:[%s5619_s13] sm:$0xff] }
 0x2ba   :  { %4164 = vmatprep.subr.mxu1 %v1233_v33  ;;  %4176 = vmatpush3.msra.mxu0 %v1237_v58 }
 0x2bb   :  { %4165 = vmatpush3.msra.mxu1 %v1233_v33  ;;  %4177 = vmatprep.subr.mxu0 %v1236_v46 }
 0x2bc   :  { %4166 = vmatprep.subr.mxu1 %v1232_v27  ;;  %4168 = vmatprep.mubr.msk.f32.mxu1 %vm87_vm0, %v5017_v63 }
 0x2bd   :  { %4167 = vmatpush3.msra.mxu1 %v1232_v27  ;;  %4178 = vmatpush3.msra.mxu0 %v1236_v46 }
 0x2be   :  { %4169 = vmatmul.mubr.msk.f32.vlgmr.msra.gmra.mxu1 %vm87_vm0, %v3630_v49  ;;  %4182 = vmatprep.subr.mxu1 %v1239_v32 }
 0x2bf   :  { %4183 = vmatpush3.msra.mxu1 %v1239_v32  ;;  %4190 = vmatprep.mubr.msk.f32.mxu1 %vm87_vm0, %v5017_v63 }
 0x2c0   :  { %4184 = vmatprep.subr.mxu1 %v1238_v36  ;;  %4180 = vmatmul.mubr.msk.f32.vlgmr.msra.gmra.mxu0 %vm87_vm0, %v3628_v35 }
 0x2c1   :  { %4185 = vmatpush3.msra.mxu1 %v1238_v36  ;;  %4193 = vmatprep.subr.mxu0 %v1600_v7 }
 0x2c2   :  { %4186 = vmatprep.subr.mxu1 %v1237_v58  ;;  %4194 = vmatpush3.msra.mxu0 %v1600_v7 }
 0x2c3   :  { %4187 = vmatpush3.msra.mxu1 %v1237_v58  ;;  %4195 = vmatprep.subr.mxu0 %v1599_v15 }
 0x2c4   :  { %4188 = vmatprep.subr.mxu1 %v1236_v46  ;;  %4196 = vmatpush3.msra.mxu0 %v1599_v15 }
 0x2c5   :  { %4189 = vmatpush3.msra.mxu1 %v1236_v46  ;;  %4197 = vmatprep.subr.mxu0 %v1598_v16  ;;  %v1728_v46 = vld [vmem:[%s5619_s13 + $0x40] sm:$0xff] }
 0x2c6   :  { %4191 = vmatmul.mubr.msk.f32.vlgmr.msra.gmra.mxu1 %vm87_vm0, %v3630_v49  ;;  %4207 = vmatprep.subr.mxu1 %v1727_v17 }
 0x2c7   :  { %4208 = vmatpush3.msra.mxu1 %v1727_v17  ;;  %4198 = vmatpush3.msra.mxu0 %v1598_v16 }
 0x2c8   :  { %4209 = vmatprep.subr.mxu1 %v1726_v38  ;;  %4199 = vmatprep.subr.mxu0 %v1597_v39 }
 0x2c9   :  { %4210 = vmatpush3.msra.mxu1 %v1726_v38  ;;  %4200 = vmatpush3.msra.mxu0 %v1597_v39 }
 0x2ca   :  { %4211 = vmatprep.subr.mxu1 %v1725_v40  ;;  %4221 = vmatprep.subr.mxu0 %v1723_v42 }
 0x2cb   :  { %4212 = vmatpush3.msra.mxu1 %v1725_v40 }
 0x2cc   :  { %4213 = vmatprep.subr.mxu1 %v1724_v41 }
 0x2cd   :  { %4214 = vmatpush3.msra.mxu1 %v1724_v41 }
 0x2ce   :  { %4235 = vmatprep.subr.mxu1 %v1731_v43 }
 0x376   :  { %v4159_v44 = vpop.f32.mrf.mxu1 }
 0x378   :  { %v1333_v45 = vpop.f32.mrf.mxu1 }
 0x37e   :  { %v4170_v47 = vpop.f32.mrf.mxu1 }
 0x37f   :  { %v1426_v48 = vrot.slane %v4170_v47, 7  ;;  %v1432_v53 = vmax.f32 %v4159_v44, %v4170_v47  ;;  %v2094_v44 = vld [vmem:[%s5622_s16 + $0x78] sm:$0xff]  ;;  %v2093_v47 = vld [vmem:[%s5622_s16 + $0x70] sm:$0xff] }
 0x380   :  { %v1414_v50 = vpop.f32.mrf.mxu1  ;;  %v4181_v55 = vpop.f32.mrf.mxu0 }
 0x381   :  { %v1425_v51 = vrot.slane %v1414_v50, 7  ;;  %v1431_v52 = vmax.f32 %v1333_v45, %v1414_v50  ;;  %v2085_v45 = vld [vmem:[%s5622_s16 + $0x30] sm:$0xff]  ;;  %v2092_v50 = vld [vmem:[%s5622_s16 + $0x68] sm:$0xff] }
 0x382   :  { %v1501_v1 = vpop.f32.mrf.mxu0 }
 0x383   :  { %v1427_v56 = vsel %vm263_vm1, %v1425_v51, %v1426_v48  ;;  %v1430_v57 = vsel %vm263_vm1, -3.4028235e+38, %v1425_v51  ;;  %v2084_v48 = vld [vmem:[%s5622_s16 + $0x28] sm:$0xff]  ;;  %v2083_v51 = vld [vmem:[%s5622_s16 + $0x20] sm:$0xff] }
 0x384   :  { %v1433_v59 = vmax.f32 %v1431_v52, %v1430_v57  ;;  %v1434_v60 = vmax.f32 %v1432_v53, %v1427_v56  ;;  %v2091_v52 = vld [vmem:[%s5622_s16 + $0x60] sm:$0xff]  ;;  %v2082_v53 = vld [vmem:[%s5622_s16 + $0x18] sm:$0xff]  ;;  %v2081_v56 = vld [vmem:[%s5622_s16 + $0x10] sm:$0xff] }
 0x385   :  { %v2089_v57 = vld [vmem:[%s5622_s16 + $0x50] sm:$0xff] }
 0x386   :  { %v1732_v61 = vrot.slane %v1433_v59, 7  ;;  %v1733_v62 = vrot.slane %v1434_v60, 7  ;;  %v4192_v0 = vpop.f32.mrf.mxu1  ;;  %4201 = vmatprep.mubr.msk.f32.mxu0 %vm87_vm0, %v1433_v59  ;;  %v2080_v59 = vld [vmem:[%s5622_s16 + $0x8] sm:$0xff] }
 0x387   :  { %4202 = vmatmul.mubr.msk.f32.vlgmr.msra.gmra.mxu0 %vm87_vm0, %v1434_v60  ;;  %v1588_v4 = vrot.slane %v4192_v0, 7  ;;  %v1594_v8 = vmax.f32 %v4181_v55, %v4192_v0  ;;  %v2090_v55 = vld [vmem:[%s5622_s16 + $0x58] sm:$0xff]  ;;  %v2088_v60 = vld [vmem:[%s5622_s16 + $0x48] sm:$0xff] }
 0x388   :  { %v1737_v3 = vsel %vm263_vm1, 0.0, %v1732_v61  ;;  %v1576_v5 = vpop.f32.mrf.mxu1  ;;  %v1734_v6 = vsel %vm263_vm1, %v1732_v61, %v1733_v62  ;;  %4222 = vmatpush3.msra.mxu0 %v1723_v42  ;;  %v1738_v9 = vsel %vm263_vm1, %v1733_v62, 0.0  ;;  %v2079_v61 = vld [vmem:[%s5622_s16] sm:$0xff]  ;;  %v5163_v0 = vld [vmem:[%s5622_s16 + $0xb8] sm:$0xff] }
 0x389   :  { %v1587_v12 = vrot.slane %v1576_v5, 7  ;;  %v1593_v18 = vmax.f32 %v1501_v1, %v1576_v5  ;;  %v1748_v19 = vrot.slane %v1737_v3, 1  ;;  %v1749_v20 = vrot.slane %v1734_v6, 1  ;;  %4223 = vmatprep.subr.mxu0 %v1722_v2  ;;  %v2087_v62 = vld [vmem:[%s5622_s16 + $0x40] sm:$0xff] }
 0x38a   :  { %v1751_v21 = vrot.slane %v1738_v9, 1  ;;  %4224 = vmatpush3.msra.mxu0 %v1722_v2  ;;  %v1946_v34 = vrot.slane %v1737_v3, 2  ;;  %v1947_v58 = vrot.slane %v1734_v6, 2  ;;  %v1949_v15 = vrot.slane %v1738_v9, 2 }
 0x38b   :  { %v1589_v23 = vsel %vm263_vm1, %v1587_v12, %v1588_v4  ;;  %v1592_v11 = vsel %vm263_vm1, -3.4028235e+38, %v1587_v12  ;;  %v1750_v24 = vsel %vm292_vm2, %v1748_v19, %v1749_v20  ;;  %4225 = vmatprep.subr.mxu0 %v1721_v10 }
 0x38c   :  { %v1596_v33 = vmax.f32 %v1594_v8, %v1589_v23  ;;  %v1595_v25 = vmax.f32 %v1593_v18, %v1592_v11  ;;  %4215 = vmatprep.mubr.msk.f32.mxu1 %vm87_vm0, %v1750_v24  ;;  %v1752_v26 = vsel %vm292_vm2, %v1749_v20, %v1751_v21  ;;  %4226 = vmatpush3.msra.mxu0 %v1721_v10  ;;  %v3657_v21 = vld [vmem:[%s5620_s14] ss:$0 sm:$0xff] }
 0x38d   :  { %4216 = vmatmul.mubr.msk.f32.vlgmr.msra.gmra.mxu1 %vm87_vm0, %v1752_v26  ;;  %4227 = vmatprep.subr.mxu0 %v1720_v22  ;;  %v1948_v16 = vsel %vm555_vm3, %v1946_v34, %v1947_v58  ;;  %v1950_v39 = vsel %vm555_vm3, %v1947_v58, %v1949_v15  ;;  %v3658_v24 = vld [vmem:[%s5621_s15] ss:$0 sm:$0xff] }
 0x38e   :  { %v1740_v27 = vrot.slane %v1596_v33, 7  ;;  %v1739_v30 = vrot.slane %v1595_v25, 7  ;;  %4204 = vmatprep.mubr.msk.f32.mxu0 %vm87_vm0, %v1595_v25  ;;  %4228 = vmatpush3.msra.mxu0 %v1720_v22 }
 0x38f   :  { %4205 = vmatmul.mubr.msk.f32.gmra.mxu0 %vm87_vm0, %v1596_v33  ;;  %4236 = vmatpush3.msra.mxu1 %v1731_v43  ;;  %v2086_v43 = vld [vmem:[%s5622_s16 + $0x38] sm:$0xff] }
 0x390   :  { %v1741_v31 = vsel %vm263_vm1, %v1739_v30, %v1740_v27  ;;  %v1744_v29 = vsel %vm263_vm1, 0.0, %v1739_v30  ;;  %4229 = vmatprep.mubr.msk.f32.mxu0 %vm87_vm0, %v1737_v3  ;;  %4237 = vmatprep.subr.mxu1 %v1730_v28  ;;  %v1745_v32 = vsel %vm263_vm1, %v1740_v27, 0.0 }
 0x391   :  { %v1755_v35 = vrot.slane %v1744_v29, 1  ;;  %v1756_v54 = vrot.slane %v1741_v31, 1  ;;  %4238 = vmatpush3.msra.mxu1 %v1730_v28  ;;  %v1758_v36 = vrot.slane %v1745_v32, 1  ;;  %v1951_v17 = vrot.slane %v1744_v29, 2  ;;  %4249 = vmatprep.subr.mxu0 %v2094_v44 }
 0x392   :  { %4239 = vmatprep.subr.mxu1 %v1729_v37  ;;  %v1952_v38 = vrot.slane %v1741_v31, 2  ;;  %v1954_v40 = vrot.slane %v1745_v32, 2 }
 0x393   :  { %4230 = vmatmul.mubr.msk.f32.vlgmr.msra.gmra.mxu0 %vm87_vm0, %v1734_v6  ;;  %v1757_v49 = vsel %vm292_vm2, %v1755_v35, %v1756_v54  ;;  %v1759_v7 = vsel %vm292_vm2, %v1756_v54, %v1758_v36  ;;  %4240 = vmatpush3.msra.mxu1 %v1729_v37 }
 0x394   :  { %4218 = vmatprep.mubr.msk.f32.mxu1 %vm87_vm0, %v1757_v49  ;;  %4232 = vmatprep.mubr.msk.f32.mxu0 %vm87_vm0, %v1744_v29  ;;  %v1953_v41 = vsel %vm555_vm3, %v1951_v17, %v1952_v38  ;;  %v1955_v42 = vsel %vm555_vm3, %v1952_v38, %v1954_v40 }
 0x395   :  { %4219 = vmatmul.mubr.msk.f32.gmra.mxu1 %vm87_vm0, %v1759_v7  ;;  %4241 = vmatprep.subr.mxu1 %v1728_v46 }
 0x396   :  { %4243 = vmatprep.mubr.msk.f32.mxu1 %vm87_vm0, %v1948_v16  ;;  %4242 = vmatpush3.msra.mxu1 %v1728_v46 }
 0x397   :  { %4233 = vmatmul.mubr.msk.f32.gmra.mxu0 %vm87_vm0, %v1741_v31  ;;  %4271 = vmatprep.subr.mxu1 %v2086_v43 }
 0x398   :  { %4250 = vmatpush3.msra.mxu0 %v2094_v44 }
 0x399   :  { %4244 = vmatmul.mubr.msk.f32.vlgmr.msra.gmra.mxu1 %vm87_vm0, %v1950_v39  ;;  %4251 = vmatprep.subr.mxu0 %v2093_v47 }
 0x39a   :  { %4246 = vmatprep.mubr.msk.f32.mxu1 %vm87_vm0, %v1953_v41  ;;  %4272 = vmatpush3.msra.mxu1 %v2086_v43 }
 0x39b   :  { %4273 = vmatprep.subr.mxu1 %v2085_v45  ;;  %4252 = vmatpush3.msra.mxu0 %v2093_v47 }
 0x39c   :  { %4274 = vmatpush3.msra.mxu1 %v2085_v45  ;;  %4253 = vmatprep.subr.mxu0 %v2092_v50 }
 0x39d   :  { %4247 = vmatmul.mubr.msk.f32.gmra.mxu1 %vm87_vm0, %v1955_v42  ;;  %4275 = vmatprep.subr.mxu1 %v2084_v48 }
 0x39e   :  { %4276 = vmatpush3.msra.mxu1 %v2084_v48  ;;  %4254 = vmatpush3.msra.mxu0 %v2092_v50 }
 0x39f   :  { %4277 = vmatprep.subr.mxu1 %v2083_v51  ;;  %4255 = vmatprep.subr.mxu0 %v2091_v52 }
 0x3a0   :  { %4278 = vmatpush3.msra.mxu1 %v2083_v51  ;;  %4256 = vmatpush3.msra.mxu0 %v2091_v52 }
 0x3a1   :  { %4279 = vmatprep.subr.mxu1 %v2082_v53  ;;  %4257 = vmatprep.subr.mxu0 %v2090_v55 }
 0x3a2   :  { %4280 = vmatpush3.msra.mxu1 %v2082_v53  ;;  %4258 = vmatpush3.msra.mxu0 %v2090_v55 }
 0x3a3   :  { %4281 = vmatprep.subr.mxu1 %v2081_v56  ;;  %4259 = vmatprep.subr.mxu0 %v2089_v57 }
 0x3a4   :  { %4282 = vmatpush3.msra.mxu1 %v2081_v56  ;;  %4260 = vmatpush3.msra.mxu0 %v2089_v57  ;;  %v2101_v56 = vld [vmem:[%s5622_s16 + $0xb0] sm:$0xff] }
 0x3a5   :  { %4283 = vmatprep.subr.mxu1 %v2080_v59  ;;  %4261 = vmatprep.subr.mxu0 %v2088_v60 }
 0x3a6   :  { %4284 = vmatpush3.msra.mxu1 %v2080_v59  ;;  %4262 = vmatpush3.msra.mxu0 %v2088_v60 }
 0x3a7   :  { %4285 = vmatprep.subr.mxu1 %v2079_v61  ;;  %4263 = vmatprep.subr.mxu0 %v2087_v62 }
 0x3a8   :  { %4286 = vmatpush3.msra.mxu1 %v2079_v61  ;;  %4264 = vmatpush3.msra.mxu0 %v2087_v62  ;;  %v2100_v62 = vld [vmem:[%s5622_s16 + $0xa8] sm:$0xff] }
 0x3a9   :  { %4315 = vmatprep.subr.mxu1 %v4531_v13  ;;  %4293 = vmatprep.subr.mxu0 %v5163_v0 }
 0x447   :  { %v5167_v1 = vpop.f32.mrf.mxu0 }
 0x449   :  { %v5169_v2 = vpop.f32.mrf.mxu0 }
 0x44d   :  { %v4217_v3 = vpop.f32.mrf.mxu1 }
 0x44f   :  { %v5171_v4 = vpop.f32.mrf.mxu0  ;;  %v1834_v6 = vpop.f32.mrf.mxu1 }
 0x451   :  { %v5173_v5 = vpop.f32.mrf.mxu0 }
 0x453   :  { %v4231_v9 = vpop.f32.mrf.mxu0 }
 0x454   :  { %v1933_v20 = vadd.f32 %v4231_v9, %v4217_v3  ;;  %v2099_v9 = vld [vmem:[%s5622_s16 + $0xa0] sm:$0xff] }
 0x455   :  { %v4220_v10 = vpop.f32.mrf.mxu1  ;;  %v1927_v12 = vpop.f32.mrf.mxu0 }
 0x456   :  { %v1928_v22 = vadd.f32 %v1927_v12, %v1834_v6  ;;  %v2097_v12 = vld [vmem:[%s5622_s16 + $0x90] sm:$0xff] }
 0x457   :  { %v1844_v18 = vpop.f32.mrf.mxu1  ;;  %v4234_v19 = vpop.f32.mrf.mxu0 }
 0x458   :  { %v1943_v25 = vadd.f32 %v4234_v19, %v4220_v10  ;;  %v2098_v10 = vld [vmem:[%s5622_s16 + $0x98] sm:$0xff]  ;;  %v2095_v19 = vld [vmem:[%s5622_s16 + $0x80] sm:$0xff] }
 0x459   :  { %v4245_v8 = vpop.f32.mrf.mxu1  ;;  %v1937_v11 = vpop.f32.mrf.mxu0 }
 0x45a   :  { %v2050_v23 = vadd.f32 %v4245_v8, %v1933_v20  ;;  %v1938_v30 = vadd.f32 %v1937_v11, %v1844_v18  ;;  %v2096_v18 = vld [vmem:[%s5622_s16 + $0x88] sm:$0xff] }
 0x45b   :  { %v2030_v33 = vpop.f32.mrf.mxu1 }
 0x45c   :  { %v2061_v26 = vmul.f32 %v3657_v21, %v2050_v23  ;;  %v2049_v28 = vadd.f32 %v2030_v33, %v1928_v22 }
 0x45d   :  { %v4248_v27 = vpop.f32.mrf.mxu1 }
 0x45e   :  { %v2072_v37 = vadd.f32 %v3658_v24, %v2061_v26  ;;  %v2060_v31 = vmul.f32 %v3657_v21, %v2049_v28  ;;  %v2052_v29 = vadd.f32 %v4248_v27, %v1943_v25 }
 0x45f   :  { %v2040_v32 = vpop.f32.mrf.mxu1 }
 0x460   :  { %v2076_v34 = vmax.f32 %v2072_v37, 0.0  ;;  %v2071_v35 = vadd.f32 %v3658_v24, %v2060_v31  ;;  %v2063_v54 = vmul.f32 %v3657_v21, %v2052_v29  ;;  %v2051_v36 = vadd.f32 %v2040_v32, %v1938_v30  ;;  %v3643_v30 = vld [vmem:[%s5617_s11] ss:$0 sm:$0xff] }
 0x461   :  { %v1706_v29 = vmul.f32 %v5167_v1, %v3643_v30 }
 0x462   :  { %v2106_v58 = vrot.slane %v2076_v34, 7  ;;  %v2075_v46 = vmax.f32 %v2071_v35, 0.0  ;;  %v2074_v49 = vadd.f32 %v3658_v24, %v2063_v54  ;;  %v2062_v7 = vmul.f32 %v3657_v21, %v2051_v36  ;;  %v3671_v35 = vld [vmem:[%s5623_s17] ss:$0 sm:$0xff] }
 0x463   :  { %v3644_v54 = vld [vmem:[%s5618_s12] ss:$0 sm:$0xff] }
 0x464   :  { %v2111_v15 = vsel %vm263_vm1, %v2106_v58, 0.0  ;;  %v2078_v16 = vmax.f32 %v2074_v49, 0.0  ;;  %v2073_v17 = vadd.f32 %v3658_v24, %v2062_v7  ;;  %v2105_v38 = vrot.slane %v2075_v46, 7  ;;  %v3672_v49 = vld [vmem:[%s5624_s18] ss:$0 sm:$0xff] }
 0x465   :  { %v2126_v43 = vrot.slane %v2111_v15, 1  ;;  %v2325_v21 = vrot.slane %v2111_v15, 2  ;;  %v1705_v46 = vmul.f32 %v3643_v30, %v5169_v2 }
 0x466   :  { %v2115_v39 = vrot.slane %v2078_v16, 7  ;;  %v2077_v40 = vmax.f32 %v2073_v17, 0.0  ;;  %v2110_v41 = vsel %vm263_vm1, 0.0, %v2105_v38  ;;  %v2107_v42 = vsel %vm263_vm1, %v2105_v38, %v2106_v58 }
 0x467   :  { %v2123_v44 = vrot.slane %v2110_v41, 1  ;;  %4287 = vmatprep.mubr.msk.f32.mxu1 %vm2135_vm8, %v2110_v41  ;;  %v2124_v45 = vrot.slane %v2107_v42, 1  ;;  %v2322_v52 = vrot.slane %v2110_v41, 2  ;;  %v2323_v61 = vrot.slane %v2107_v42, 2 }
 0x468   :  { %v2120_v47 = vsel %vm263_vm1, %v2115_v39, 0.0  ;;  %4288 = vmatmul.mubr.msk.f32.vlgmr.msra.gmra.mxu1 %vm2135_vm8, %v2107_v42  ;;  %v2114_v48 = vrot.slane %v2077_v40, 7  ;;  %v1717_v17 = vadd.f32 %v3644_v54, %v1706_v29 }
 0x469   :  { %v2125_v50 = vsel %vm292_vm2, %v2123_v44, %v2124_v45  ;;  %v2127_v51 = vsel %vm292_vm2, %v2124_v45, %v2126_v43  ;;  %v2133_v60 = vrot.slane %v2120_v47, 1  ;;  %v2326_v22 = vsel %vm555_vm3, %v2323_v61, %v2325_v21  ;;  %v2763_v21 = vld [vmem:[%s5625_s19 + $0x18] sm:$0xff] }
 0x46a   :  { %4265 = vmatprep.mubr.msk.f32.mxu0 %vm2135_vm8, %v2125_v50  ;;  %v2119_v53 = vsel %vm263_vm1, 0.0, %v2114_v48  ;;  %v2116_v55 = vsel %vm263_vm1, %v2114_v48, %v2115_v39  ;;  %v2330_v11 = vrot.slane %v2120_v47, 2  ;;  %v1716_v44 = vadd.f32 %v3644_v54, %v1705_v46 }
 0x46b   :  { %4266 = vmatmul.mubr.msk.f32.vlgmr.msra.gmra.mxu0 %vm2135_vm8, %v2127_v51  ;;  %v2130_v57 = vrot.slane %v2119_v53, 1  ;;  %4290 = vmatprep.mubr.msk.f32.mxu1 %vm2135_vm8, %v2119_v53  ;;  %v2131_v59 = vrot.slane %v2116_v55, 1  ;;  %v2327_v20 = vrot.slane %v2119_v53, 2  ;;  %v2328_v8 = vrot.slane %v2116_v55, 2 }
 0x46c   :  { %4294 = vmatpush3.msra.mxu0 %v5163_v0  ;;  %4291 = vmatmul.mubr.msk.f32.gmra.mxu1 %vm2135_vm8, %v2116_v55  ;;  %v2324_v0 = vsel %vm555_vm3, %v2322_v52, %v2323_v61  ;;  %v1708_v45 = vmul.f32 %v5171_v4, %v3643_v30  ;;  %v1707_v52 = vmul.f32 %v3643_v30, %v5173_v5 }
 0x46d   :  { %4295 = vmatprep.subr.mxu0 %v2101_v56  ;;  %v2132_v3 = vsel %vm292_vm2, %v2130_v57, %v2131_v59  ;;  %v2134_v6 = vsel %vm292_vm2, %v2131_v59, %v2133_v60  ;;  %v2329_v23 = vsel %vm555_vm3, %v2327_v20, %v2328_v8  ;;  %v2331_v24 = vsel %vm555_vm3, %v2328_v8, %v2330_v11  ;;  %v2764_v20 = vld [vmem:[%s5625_s19 + $0x20] sm:$0xff]  ;;  %v3679_v8 = vld [vmem:[%s5625_s19 + $0x50] sm:$0xff] }
 0x46e   :  { %4296 = vmatpush3.msra.mxu0 %v2101_v56  ;;  %4268 = vmatprep.mubr.msk.f32.mxu0 %vm2135_vm8, %v2132_v3  ;;  %v1719_v59 = vadd.f32 %v3644_v54, %v1708_v45  ;;  %v3677_v11 = vld [vmem:[%s5625_s19 + $0x40] sm:$0xff] }
 0x46f   :  { %4297 = vmatprep.subr.mxu0 %v2100_v62  ;;  %4269 = vmatmul.mubr.msk.f32.gmra.mxu0 %vm2135_vm8, %v2134_v6  ;;  %v3700_v45 = vld [vmem:[%s5625_s19 + $0xe0] sm:$0xff] }
 0x470   :  { %4298 = vmatpush3.msra.mxu0 %v2100_v62  ;;  %4309 = vmatprep.mubr.msk.f32.mxu0 %vm2135_vm8, %v2324_v0  ;;  %v1718_v62 = vadd.f32 %v3644_v54, %v1707_v52  ;;  %v3682_v0 = vld [vmem:[%s5625_s19 + $0x68] sm:$0xff]  ;;  %v3687_v52 = vld [vmem:[%s5625_s19 + $0x80] sm:$0xff] }
 0x471   :  { %4299 = vmatprep.subr.mxu0 %v2099_v9  ;;  %4319 = vmatprep.mubr.msk.f32.mxu1 %vm4532_vm9, %v4531_v13 }
 0x472   :  { %4300 = vmatpush3.msra.mxu0 %v2099_v9  ;;  %v3683_v9 = vld [vmem:[%s5625_s19 + $0x70] sm:$0xff] }
 0x473   :  { %4301 = vmatprep.subr.mxu0 %v2098_v10 }
 0x474   :  { %4302 = vmatpush3.msra.mxu0 %v2098_v10  ;;  %v2766_v10 = vld [vmem:[%s5625_s19 + $0x30] sm:$0xff] }
 0x475   :  { %4303 = vmatprep.subr.mxu0 %v2097_v12 }
 0x476   :  { %4304 = vmatpush3.msra.mxu0 %v2097_v12  ;;  %v3681_v12 = vld [vmem:[%s5625_s19 + $0x60] sm:$0xff] }
 0x477   :  { %4305 = vmatprep.subr.mxu0 %v2096_v18 }
 0x478   :  { %4306 = vmatpush3.msra.mxu0 %v2096_v18  ;;  %v2765_v18 = vld [vmem:[%s5625_s19 + $0x28] sm:$0xff] }
 0x479   :  { %4307 = vmatprep.subr.mxu0 %v2095_v19 }
 0x47a   :  { %4308 = vmatpush3.msra.mxu0 %v2095_v19  ;;  %v3680_v19 = vld [vmem:[%s5625_s19 + $0x58] sm:$0xff] }
 0x47b   :  { %4310 = vmatmul.mubr.msk.f32.vlgmr.msra.gmra.mxu0 %vm2135_vm8, %v2326_v22  ;;  %4343 = vmatprep.subr.mxu0 %v4531_v13  ;;  %v3678_v22 = vld [vmem:[%s5625_s19 + $0x48] sm:$0xff] }
 0x47c   :  { %4312 = vmatprep.mubr.msk.f32.mxu0 %vm2135_vm8, %v2329_v23  ;;  %v2762_v23 = vld [vmem:[%s5625_s19 + $0x10] sm:$0xff] }
 0x47f   :  { %4313 = vmatmul.mubr.msk.f32.gmra.mxu0 %vm2135_vm8, %v2331_v24  ;;  %v2761_v24 = vld [vmem:[%s5625_s19 + $0x8] sm:$0xff] }
 0x480   :  { %4359 = vmatprep.mubr.msk.f32.mxu0 %vm4532_vm9, %v4531_v13 }
 0x528   :  { %v4289_v26 = vpop.f32.mrf.mxu1 }
 0x52a   :  { %v2303_v27 = vpop.f32.mrf.mxu1 }
 0x52b   :  { %v4267_v33 = vpop.f32.mrf.mxu0 }
 0x52c   :  { %v2309_v31 = vadd.f32 %v4289_v26, %v4267_v33  ;;  %v4292_v32 = vpop.f32.mrf.mxu1  ;;  %v2760_v33 = vld [vmem:[%s5625_s19] sm:$0xff] }
 0x52d   :  { %v2210_v25 = vpop.f32.mrf.mxu0 }
 0x52e   :  { %v2304_v36 = vadd.f32 %v2303_v27, %v2210_v25  ;;  %v2313_v38 = vpop.f32.mrf.mxu1 }
 0x52f   :  { %v4270_v28 = vpop.f32.mrf.mxu0 }
 0x530   :  { %v2319_v1 = vadd.f32 %v4292_v32, %v4270_v28 }
 0x531   :  { %v2220_v37 = vpop.f32.mrf.mxu0 }
 0x532   :  { %v2314_v40 = vadd.f32 %v2313_v38, %v2220_v37  ;;  %v3703_v38 = vld [vmem:[%s5625_s19 + $0xf8] sm:$0xff] }
 0x53b   :  { %v4311_v34 = vpop.f32.mrf.mxu0 }
 0x53c   :  { %v2426_v58 = vadd.f32 %v4311_v34, %v2309_v31 }
 0x53d   :  { %v2406_v7 = vpop.f32.mrf.mxu0 }
 0x53e   :  { %v2437_v15 = vmul.f32 %v3671_v35, %v2426_v58  ;;  %v2425_v16 = vadd.f32 %v2406_v7, %v2304_v36 }
 0x53f   :  { %v4314_v39 = vpop.f32.mrf.mxu0 }
 0x540   :  { %v2448_v41 = vadd.f32 %v3672_v49, %v2437_v15  ;;  %v2436_v42 = vmul.f32 %v3671_v35, %v2425_v16  ;;  %v2428_v43 = vadd.f32 %v4314_v39, %v2319_v1  ;;  %v3694_v1 = vld [vmem:[%s5625_s19 + $0xb8] sm:$0xff] }
 0x541   :  { %v2416_v47 = vpop.f32.mrf.mxu0 }
 0x542   :  { %v2452_v2 = vadd.f32 %v2448_v41, %v1717_v17  ;;  %v2447_v48 = vadd.f32 %v3672_v49, %v2436_v42  ;;  %v2439_v50 = vmul.f32 %v3671_v35, %v2428_v43  ;;  %v2427_v51 = vadd.f32 %v2416_v47, %v2314_v40  ;;  %v3693_v17 = vld [vmem:[%s5625_s19 + $0xb0] sm:$0xff]  ;;  %v3692_v40 = vld [vmem:[%s5625_s19 + $0xa8] sm:$0xff]  ;;  %v3691_v42 = vld [vmem:[%s5625_s19 + $0xa0] sm:$0xff] }
 0x543   :  { %v3702_v41 = vld [vmem:[%s5625_s19 + $0xf0] sm:$0xff]  ;;  %v3701_v43 = vld [vmem:[%s5625_s19 + $0xe8] sm:$0xff] }
 0x544   :  { %v2456_v53 = vmax.f32 %v2452_v2, 0.0  ;;  %v2451_v55 = vadd.f32 %v2447_v48, %v1716_v44  ;;  %v2450_v56 = vadd.f32 %v3672_v49, %v2439_v50  ;;  %v2438_v57 = vmul.f32 %v3671_v35, %v2427_v51  ;;  %v3690_v44 = vld [vmem:[%s5625_s19 + $0x98] sm:$0xff]  ;;  %v3689_v47 = vld [vmem:[%s5625_s19 + $0x90] sm:$0xff]  ;;  %v3688_v48 = vld [vmem:[%s5625_s19 + $0x88] sm:$0xff] }
 0x545   :  { %v3699_v2 = vld [vmem:[%s5625_s19 + $0xd8] sm:$0xff]  ;;  %v3698_v50 = vld [vmem:[%s5625_s19 + $0xd0] sm:$0xff] }
 0x546   :  { %v2455_v60 = vmax.f32 %v2451_v55, 0.0  ;;  %v2449_v61 = vadd.f32 %v3672_v49, %v2438_v57  ;;  %4316 = vmatpush3.msra.mxu1 %v2456_v53  ;;  %v2454_v4 = vadd.f32 %v2450_v56, %v1719_v59  ;;  %v3696_v56 = vld [vmem:[%s5625_s19 + $0xc0] sm:$0xff] }
 0x547   :  { %4317 = vmatprep.subr.mxu1 %v4531_v13 }
 0x548   :  { %4318 = vmatpush3.msra.mxu1 %v2455_v60  ;;  %v2453_v5 = vadd.f32 %v2449_v61, %v1718_v62  ;;  %v2458_v3 = vmax.f32 %v2454_v4, 0.0  ;;  %v3711_v62 = vld [vmem:[%s5625_s19 + $0x130] sm:$0xff] }
 0x549   :  { %4320 = vmatmul.mubr.msk.f32.vlgmr.msra.gmra.mxu1 %vm2459_vm10, %v4976_v14  ;;  %4322 = vmatprep.subr.mxu1 %v4531_v13 }
 0x54a   :  { %4323 = vmatpush3.msra.mxu1 %v2456_v53  ;;  %4326 = vmatprep.mubr.msk.f32.mxu1 %vm4532_vm9, %v4531_v13  ;;  %v2457_v6 = vmax.f32 %v2453_v5, 0.0  ;;  %v3697_v53 = vld [vmem:[%s5625_s19 + $0xc8] sm:$0xff]  ;;  %v3721_v5 = vld [vmem:[%s5625_s19 + $0x178] sm:$0xff] }
 0x54b   :  { %4324 = vmatprep.subr.mxu1 %v4531_v13 }
 0x54c   :  { %4325 = vmatpush3.msra.mxu1 %v2455_v60  ;;  %v3712_v60 = vld [vmem:[%s5625_s19 + $0x138] sm:$0xff] }
 0x54d   :  { %4327 = vmatmul.mubr.msk.f32.vlgmr.msra.gmra.mxu1 %vm2459_vm10, %v5017_v63  ;;  %4329 = vmatprep.subr.mxu1 %v4531_v13 }
 0x54e   :  { %4330 = vmatpush3.msra.mxu1 %v2458_v3  ;;  %4333 = vmatprep.mubr.msk.f32.mxu1 %vm4532_vm9, %v4531_v13 }
 0x54f   :  { %4331 = vmatprep.subr.mxu1 %v4531_v13 }
 0x550   :  { %4332 = vmatpush3.msra.mxu1 %v2457_v6 }
 0x551   :  { %4334 = vmatmul.mubr.msk.f32.vlgmr.msra.gmra.mxu1 %vm2459_vm10, %v4976_v14  ;;  %4336 = vmatprep.subr.mxu1 %v4531_v13  ;;  %v3684_v14 = vld [vmem:[%s5625_s19 + $0x78] sm:$0xff] }
 0x552   :  { %4337 = vmatpush3.msra.mxu1 %v2458_v3  ;;  %4340 = vmatprep.mubr.msk.f32.mxu1 %vm4532_vm9, %v4531_v13  ;;  %v3710_v3 = vld [vmem:[%s5625_s19 + $0x128] sm:$0xff] }
 0x553   :  { %4338 = vmatprep.subr.mxu1 %v4531_v13  ;;  %4344 = vmatpush3.msra.mxu0 %v3684_v14  ;;  %v3709_v14 = vld [vmem:[%s5625_s19 + $0x120] sm:$0xff] }
 0x554   :  { %4339 = vmatpush3.msra.mxu1 %v2457_v6  ;;  %4345 = vmatprep.subr.mxu0 %v4531_v13  ;;  %v3720_v6 = vld [vmem:[%s5625_s19 + $0x170] sm:$0xff] }
 0x555   :  { %4341 = vmatmul.mubr.msk.f32.vlgmr.msra.gmra.mxu1 %vm2459_vm10, %v5017_v63  ;;  %4362 = vmatprep.subr.mxu1 %v4531_v13  ;;  %v2767_v63 = vld [vmem:[%s5625_s19 + $0x38] sm:$0xff] }
 0x556   :  { %4378 = vmatprep.mubr.msk.f32.mxu1 %vm4532_vm9, %v4531_v13  ;;  %4346 = vmatpush3.msra.mxu0 %v3683_v9  ;;  %v3719_v9 = vld [vmem:[%s5625_s19 + $0x168] sm:$0xff] }
 0x557   :  { %4363 = vmatpush3.msra.mxu1 %v2767_v63  ;;  %4347 = vmatprep.subr.mxu0 %v4531_v13  ;;  %v3708_v63 = vld [vmem:[%s5625_s19 + $0x118] sm:$0xff] }
 0x558   :  { %4364 = vmatprep.subr.mxu1 %v4531_v13  ;;  %4348 = vmatpush3.msra.mxu0 %v3682_v0  ;;  %v3718_v0 = vld [vmem:[%s5625_s19 + $0x160] sm:$0xff] }
 0x559   :  { %4365 = vmatpush3.msra.mxu1 %v2766_v10  ;;  %4349 = vmatprep.subr.mxu0 %v4531_v13  ;;  %v3707_v10 = vld [vmem:[%s5625_s19 + $0x110] sm:$0xff] }
 0x55a   :  { %4366 = vmatprep.subr.mxu1 %v4531_v13  ;;  %4350 = vmatpush3.msra.mxu0 %v3681_v12  ;;  %v3717_v12 = vld [vmem:[%s5625_s19 + $0x158] sm:$0xff] }
 0x55b   :  { %4367 = vmatpush3.msra.mxu1 %v2765_v18  ;;  %4351 = vmatprep.subr.mxu0 %v4531_v13  ;;  %v3706_v18 = vld [vmem:[%s5625_s19 + $0x108] sm:$0xff] }
 0x55c   :  { %4368 = vmatprep.subr.mxu1 %v4531_v13  ;;  %4352 = vmatpush3.msra.mxu0 %v3680_v19  ;;  %v3716_v19 = vld [vmem:[%s5625_s19 + $0x150] sm:$0xff] }
 0x55d   :  { %4369 = vmatpush3.msra.mxu1 %v2764_v20  ;;  %4353 = vmatprep.subr.mxu0 %v4531_v13  ;;  %v3705_v20 = vld [vmem:[%s5625_s19 + $0x100] sm:$0xff] }
 0x55e   :  { %4370 = vmatprep.subr.mxu1 %v4531_v13  ;;  %4354 = vmatpush3.msra.mxu0 %v3679_v8 }
 0x55f   :  { %4371 = vmatpush3.msra.mxu1 %v2763_v21  ;;  %4355 = vmatprep.subr.mxu0 %v4531_v13  ;;  %v3715_v21 = vld [vmem:[%s5625_s19 + $0x148] sm:$0xff] }
 0x560   :  { %4372 = vmatprep.subr.mxu1 %v4531_v13  ;;  %4356 = vmatpush3.msra.mxu0 %v3678_v22 }
 0x561   :  { %4373 = vmatpush3.msra.mxu1 %v2762_v23  ;;  %4357 = vmatprep.subr.mxu0 %v4531_v13  ;;  %v3714_v23 = vld [vmem:[%s5625_s19 + $0x140] sm:$0xff] }
 0x562   :  { %4374 = vmatprep.subr.mxu1 %v4531_v13  ;;  %4358 = vmatpush3.msra.mxu0 %v3677_v11 }
 0x563   :  { %4375 = vmatpush3.msra.mxu1 %v2761_v24  ;;  %4381 = vmatprep.subr.mxu0 %v4531_v13 }
 0x564   :  { %4376 = vmatprep.subr.mxu1 %v4531_v13 }
 0x565   :  { %4377 = vmatpush3.msra.mxu1 %v2760_v33  ;;  %v3730_v33 = vld [vmem:[%s5625_s19 + $0x1b8] sm:$0xff] }
 0x566   :  { %4400 = vmatprep.subr.mxu1 %v4531_v13 }
 0x609   :  { %v2528_v25 = vpop.f32.mrf.mxu1 }
 0x60b   :  { %v4321_v26 = vpop.f32.mrf.mxu1 }
 0x60c   :  { %v3729_v26 = vld [vmem:[%s5625_s19 + $0x1b0] sm:$0xff] }
 0x60d   :  { %v2600_v28 = vpop.f32.mrf.mxu1 }
 0x60e   :  { %v2605_v27 = vrot.slane %v2600_v28, 7  ;;  %v2608_v37 = vmax.f32 %v2528_v25, %v2600_v28 }
 0x60f   :  { %v4328_v30 = vpop.f32.mrf.mxu1 }
 0x610   :  { %v2607_v29 = vsel %vm263_vm1, -3.4028235e+38, %v2605_v27  ;;  %v3739_v27 = vld [vmem:[%s5625_s19 + $0x1f8] sm:$0xff]  ;;  %v3728_v30 = vld [vmem:[%s5625_s19 + $0x1a8] sm:$0xff] }
 0x611   :  { %v2676_v31 = vpop.f32.mrf.mxu1  ;;  %v5339_v34 = vmax.f32 %v2608_v37, %v2607_v29  ;;  %v3738_v37 = vld [vmem:[%s5625_s19 + $0x1f0] sm:$0xff]  ;;  %v3737_v29 = vld [vmem:[%s5625_s19 + $0x1e8] sm:$0xff] }
 0x613   :  { %v4335_v32 = vpop.f32.mrf.mxu1  ;;  %v2769_v7 = vrot.slane %v5339_v34, 1  ;;  %v2927_v55 = vrot.slane %v5339_v34, 2  ;;  %v3015_v61 = vrot.slane %v5339_v34, 3  ;;  %v3103_v22 = vrot.slane %v5339_v34, 4 }
 0x614   :  { %v3191_v25 = vrot.slane %v5339_v34, 5  ;;  %v3726_v32 = vld [vmem:[%s5625_s19 + $0x198] sm:$0xff] }
 0x615   :  { %v2746_v35 = vpop.f32.mrf.mxu1 }
 0x616   :  { %v2751_v54 = vrot.slane %v2746_v35, 7  ;;  %v2754_v36 = vmax.f32 %v2676_v31, %v2746_v35  ;;  %v3727_v31 = vld [vmem:[%s5625_s19 + $0x1a0] sm:$0xff] }
 0x617   :  { %v4342_v58 = vpop.f32.mrf.mxu1  ;;  %v3736_v35 = vld [vmem:[%s5625_s19 + $0x1e0] sm:$0xff] }
 0x618   :  { %v2753_v46 = vsel %vm263_vm1, -3.4028235e+38, %v2751_v54  ;;  %v3725_v54 = vld [vmem:[%s5625_s19 + $0x190] sm:$0xff]  ;;  %v3724_v58 = vld [vmem:[%s5625_s19 + $0x188] sm:$0xff] }
 0x619   :  { %v5342_v49 = vmax.f32 %v2754_v36, %v2753_v46  ;;  %v3735_v36 = vld [vmem:[%s5625_s19 + $0x1d8] sm:$0xff]  ;;  %v3734_v46 = vld [vmem:[%s5625_s19 + $0x1d0] sm:$0xff] }
 0x61b   :  { %v2771_v15 = vsel %vm263_vm1, %v2769_v7, %v5342_v49  ;;  %v2757_v16 = vrot.slane %v5342_v49, 7  ;;  %v2929_v51 = vrot.slane %v5342_v49, 1  ;;  %v3017_v57 = vrot.slane %v5342_v49, 2  ;;  %v3723_v7 = vld [vmem:[%s5625_s19 + $0x180] sm:$0xff] }
 0x61c   :  { %4360 = vmatmul.mubr.msk.f32.vlgmr.msra.gmra.mxu0 %vm2135_vm8, %v2771_v15  ;;  %v3105_v8 = vrot.slane %v5342_v49, 3  ;;  %v3193_v11 = vrot.slane %v5342_v49, 4  ;;  %v3733_v15 = vld [vmem:[%s5625_s19 + $0x1c8] sm:$0xff] }
 0x61d   :  { %4382 = vmatpush3.msra.mxu0 %v3694_v1  ;;  %v2759_v39 = vsel %vm263_vm1, %v5339_v34, %v2757_v16  ;;  %4397 = vmatprep.mubr.msk.f32.mxu0 %vm4532_vm9, %v4531_v13  ;;  %v2931_v59 = vsel %vm263_vm1, %v2927_v55, %v2929_v51  ;;  %v3019_v4 = vsel %vm263_vm1, %v3015_v61, %v3017_v57  ;;  %v3281_v1 = vrot.slane %v5342_v49, 5 }
 0x61e   :  { %4383 = vmatprep.subr.mxu0 %v4531_v13  ;;  %4379 = vmatmul.mubr.msk.f32.vlgmr.msra.gmra.mxu1 %vm2135_vm8, %v2759_v39  ;;  %v3107_v24 = vsel %vm263_vm1, %v3103_v22, %v3105_v8  ;;  %v3195_v28 = vsel %vm263_vm1, %v3191_v25, %v3193_v11  ;;  %v3279_v16 = vrot.slane %v5339_v34, 6 }
 0x61f   :  { %4384 = vmatpush3.msra.mxu0 %v3693_v17  ;;  %4401 = vmatpush3.msra.mxu1 %v3703_v38  ;;  %v3369_v17 = vrot.slane %v5342_v49, 6  ;;  %v3732_v38 = vld [vmem:[%s5625_s19 + $0x1c0] sm:$0xff] }
 0x620   :  { %4385 = vmatprep.subr.mxu0 %v4531_v13  ;;  %4402 = vmatprep.subr.mxu1 %v4531_v13  ;;  %v3283_v39 = vsel %vm263_vm1, %v3279_v16, %v3281_v1 }
 0x621   :  { %4386 = vmatpush3.msra.mxu0 %v3692_v40  ;;  %4403 = vmatpush3.msra.mxu1 %v3702_v41  ;;  %v3367_v40 = vrot.slane %v5339_v34, 7  ;;  %v3467_v34 = vld [vmem:[%s5627_s21 + $0x18] sm:$0xff]  ;;  %v3466_v41 = vld [vmem:[%s5627_s21 + $0x10] sm:$0xff] }
 0x622   :  { %4387 = vmatprep.subr.mxu0 %v4531_v13  ;;  %4404 = vmatprep.subr.mxu1 %v4531_v13 }
 0x623   :  { %4388 = vmatpush3.msra.mxu0 %v3691_v42  ;;  %4405 = vmatpush3.msra.mxu1 %v3701_v43  ;;  %v3371_v49 = vsel %vm263_vm1, %v3367_v40, %v3369_v17  ;;  %v3465_v42 = vld [vmem:[%s5627_s21 + $0x8] sm:$0xff]  ;;  %v3464_v43 = vld [vmem:[%s5627_s21] sm:$0xff] }
 0x624   :  { %4389 = vmatprep.subr.mxu0 %v4531_v13  ;;  %4406 = vmatprep.subr.mxu1 %v4531_v13 }
 0x625   :  { %4390 = vmatpush3.msra.mxu0 %v3690_v44  ;;  %4407 = vmatpush3.msra.mxu1 %v3700_v45 }
 0x626   :  { %4391 = vmatprep.subr.mxu0 %v4531_v13  ;;  %4408 = vmatprep.subr.mxu1 %v4531_v13 }
 0x627   :  { %4392 = vmatpush3.msra.mxu0 %v3689_v47  ;;  %4409 = vmatpush3.msra.mxu1 %v3699_v2 }
 0x628   :  { %4393 = vmatprep.subr.mxu0 %v4531_v13  ;;  %4410 = vmatprep.subr.mxu1 %v4531_v13 }
 0x629   :  { %4394 = vmatpush3.msra.mxu0 %v3688_v48  ;;  %4411 = vmatpush3.msra.mxu1 %v3698_v50 }
 0x62a   :  { %4395 = vmatprep.subr.mxu0 %v4531_v13  ;;  %4412 = vmatprep.subr.mxu1 %v4531_v13 }
 0x62b   :  { %4396 = vmatpush3.msra.mxu0 %v3687_v52  ;;  %4413 = vmatpush3.msra.mxu1 %v3697_v53 }
 0x62c   :  { %4398 = vmatmul.mubr.msk.f32.vlgmr.msra.gmra.mxu0 %vm2135_vm8, %v2931_v59  ;;  %4414 = vmatprep.subr.mxu1 %v4531_v13 }
 0x62d   :  { %4419 = vmatprep.subr.mxu0 %v4531_v13  ;;  %4415 = vmatpush3.msra.mxu1 %v3696_v56 }
 0x62e   :  { %4416 = vmatprep.mubr.msk.f32.mxu1 %vm4532_vm9, %v4531_v13  ;;  %4420 = vmatpush3.msra.mxu0 %v3712_v60 }
 0x62f   :  { %4417 = vmatmul.mubr.msk.f32.vlgmr.msra.gmra.mxu1 %vm2135_vm8, %v3019_v4  ;;  %4421 = vmatprep.subr.mxu0 %v4531_v13 }
 0x630   :  { %4438 = vmatprep.subr.mxu1 %v4531_v13  ;;  %4422 = vmatpush3.msra.mxu0 %v3711_v62 }
 0x631   :  { %4439 = vmatpush3.msra.mxu1 %v3721_v5  ;;  %4423 = vmatprep.subr.mxu0 %v4531_v13 }
 0x632   :  { %4440 = vmatprep.subr.mxu1 %v4531_v13  ;;  %4424 = vmatpush3.msra.mxu0 %v3710_v3 }
 0x633   :  { %4441 = vmatpush3.msra.mxu1 %v3720_v6  ;;  %4425 = vmatprep.subr.mxu0 %v4531_v13 }
 0x634   :  { %4442 = vmatprep.subr.mxu1 %v4531_v13  ;;  %4426 = vmatpush3.msra.mxu0 %v3709_v14  ;;  %v3741_v14 = vld [vmem:[%s5626_s20] ss:$0 sm:$0xff]  ;;  %s4509_s20 = scalar_lea.vmem %s3558_s2, 32 }
 0x635   :  { %4443 = vmatpush3.msra.mxu1 %v3719_v9  ;;  %4427 = vmatprep.subr.mxu0 %v4531_v13  ;;  %p4510_p0 = scmp.ne.s32.totalorder %s3558_s2, %s4509_s20  ;;  %p4515_p2 = scmp.lt.s32.totalorder %s4509_s20, %s4509_s20 }
 0x636   :  { %4444 = vmatprep.subr.mxu1 %v4531_v13  ;;  %4428 = vmatpush3.msra.mxu0 %v3708_v63 }
 0x637   :  { %4445 = vmatpush3.msra.mxu1 %v3718_v0  ;;  %4429 = vmatprep.subr.mxu0 %v4531_v13  ;;  %p4516_p3 = por %p4515_p2, %p4514_p1 }
 0x638   :  { %4446 = vmatprep.subr.mxu1 %v4531_v13  ;;  %4430 = vmatpush3.msra.mxu0 %v3707_v10 }
 0x639   :  { %4447 = vmatpush3.msra.mxu1 %v3717_v12  ;;  %4431 = vmatprep.subr.mxu0 %v4531_v13  ;;  %v3742_v12 = vld [vmem:[%s5628_s22] ss:$0 sm:$0xff]  ;;  %p4517_p4 = pnand %p4516_p3, %p4510_p0 }
 0x63a   :  { %4448 = vmatprep.subr.mxu1 %v4531_v13  ;;  %4432 = vmatpush3.msra.mxu0 %v3706_v18 }
 0x63b   :  { %4449 = vmatpush3.msra.mxu1 %v3716_v19  ;;  %4433 = vmatprep.subr.mxu0 %v4531_v13 }
 0x63c   :  { %4450 = vmatprep.subr.mxu1 %v4531_v13  ;;  %4434 = vmatpush3.msra.mxu0 %v3705_v20 }
 0x63d   :  { %4435 = vmatprep.mubr.msk.f32.mxu0 %vm4532_vm9, %v4531_v13  ;;  %4451 = vmatpush3.msra.mxu1 %v3715_v21 }
 0x63e   :  { %4436 = vmatmul.mubr.msk.f32.vlgmr.msra.gmra.mxu0 %vm2135_vm8, %v3107_v24  ;;  %4452 = vmatprep.subr.mxu1 %v4531_v13 }
 0x63f   :  { %4457 = vmatprep.subr.mxu0 %v4531_v13  ;;  %4453 = vmatpush3.msra.mxu1 %v3714_v23 }
 0x640   :  { %4454 = vmatprep.mubr.msk.f32.mxu1 %vm4532_vm9, %v4531_v13  ;;  %4458 = vmatpush3.msra.mxu0 %v3730_v33 }
 0x641   :  { %4455 = vmatmul.mubr.msk.f32.vlgmr.msra.gmra.mxu1 %vm2135_vm8, %v3195_v28  ;;  %4459 = vmatprep.subr.mxu0 %v4531_v13 }
 0x642   :  { %4476 = vmatprep.subr.mxu1 %v4531_v13  ;;  %4460 = vmatpush3.msra.mxu0 %v3729_v26 }
 0x643   :  { %4477 = vmatpush3.msra.mxu1 %v3739_v27  ;;  %4461 = vmatprep.subr.mxu0 %v4531_v13 }
 0x644   :  { %4478 = vmatprep.subr.mxu1 %v4531_v13  ;;  %4462 = vmatpush3.msra.mxu0 %v3728_v30 }
 0x645   :  { %4479 = vmatpush3.msra.mxu1 %v3738_v37  ;;  %4463 = vmatprep.subr.mxu0 %v4531_v13 }
 0x646   :  { %4480 = vmatprep.subr.mxu1 %v4531_v13  ;;  %4464 = vmatpush3.msra.mxu0 %v3727_v31 }
 0x647   :  { %4481 = vmatpush3.msra.mxu1 %v3737_v29  ;;  %4465 = vmatprep.subr.mxu0 %v4531_v13 }
 0x648   :  { %4482 = vmatprep.subr.mxu1 %v4531_v13  ;;  %4466 = vmatpush3.msra.mxu0 %v3726_v32 }
 0x649   :  { %4483 = vmatpush3.msra.mxu1 %v3736_v35  ;;  %4467 = vmatprep.subr.mxu0 %v4531_v13 }
 0x64a   :  { %4484 = vmatprep.subr.mxu1 %v4531_v13  ;;  %4468 = vmatpush3.msra.mxu0 %v3725_v54 }
 0x64b   :  { %4485 = vmatpush3.msra.mxu1 %v3735_v36  ;;  %4469 = vmatprep.subr.mxu0 %v4531_v13 }
 0x64c   :  { %4486 = vmatprep.subr.mxu1 %v4531_v13  ;;  %4470 = vmatpush3.msra.mxu0 %v3724_v58 }
 0x64d   :  { %4487 = vmatpush3.msra.mxu1 %v3734_v46  ;;  %4471 = vmatprep.subr.mxu0 %v4531_v13 }
 0x64e   :  { %4488 = vmatprep.subr.mxu1 %v4531_v13  ;;  %4472 = vmatpush3.msra.mxu0 %v3723_v7 }
 0x64f   :  { %4473 = vmatprep.mubr.msk.f32.mxu0 %vm4532_vm9, %v4531_v13  ;;  %4489 = vmatpush3.msra.mxu1 %v3733_v15 }
 0x650   :  { %4474 = vmatmul.mubr.msk.f32.vlgmr.msra.gmra.mxu0 %vm2135_vm8, %v3283_v39  ;;  %4490 = vmatprep.subr.mxu1 %v4531_v13 }
 0x651   :  { %4491 = vmatpush3.msra.mxu1 %v3732_v38  ;;  %4492 = vmatprep.mubr.msk.f32.mxu1 %vm4532_vm9, %v4531_v13 }
 0x652   :  { %4493 = vmatmul.mubr.msk.f32.vlgmr.msra.gmra.mxu1 %vm2135_vm8, %v3371_v49  ;;  %4495 = vmatprep.subr.mxu0 %v4531_v13 }
 0x653   :  { %4503 = vmatprep.mubr.msk.f32.mxu0 %vm4532_vm9, %v4531_v13  ;;  %4496 = vmatpush3.msra.mxu0 %v3467_v34 }
 0x654   :  { %4497 = vmatprep.subr.mxu0 %v4531_v13 }
 0x655   :  { %4498 = vmatpush3.msra.mxu0 %v3466_v41 }
 0x656   :  { %4499 = vmatprep.subr.mxu0 %v4531_v13 }
 0x657   :  { %4500 = vmatpush3.msra.mxu0 %v3465_v42 }
 0x658   :  { %4501 = vmatprep.subr.mxu0 %v4531_v13 }
 0x659   :  { %4502 = vmatpush3.msra.mxu0 %v3464_v43 }
 0x6dc   :  { %v2850_v44 = vpop.f32.mrf.mxu0 }
 0x6de   :  { %v4361_v45 = vpop.f32.mrf.mxu0  ;;  %v2923_v47 = vpop.f32.mrf.mxu1 }
 0x6df   :  { %v2924_v57 = vadd.f32 %v2923_v47, %v2850_v44 }
 0x6e0   :  { %v4380_v2 = vpop.f32.mrf.mxu1 }
 0x6ec   :  { %v3010_v48 = vpop.f32.mrf.mxu0 }
 0x6ed   :  { %v3014_v60 = vadd.f32 %v3010_v48, %v2924_v57 }
 0x6ee   :  { %v4399_v50 = vpop.f32.mrf.mxu0 }
 0x6ef   :  { %v3098_v51 = vpop.f32.mrf.mxu1 }
 0x6f0   :  { %v3102_v61 = vadd.f32 %v3098_v51, %v3014_v60 }
 0x6f1   :  { %v4418_v52 = vpop.f32.mrf.mxu1 }
 0x6fe   :  { %v3186_v53 = vpop.f32.mrf.mxu0 }
 0x6ff   :  { %v3190_v62 = vadd.f32 %v3186_v53, %v3102_v61 }
 0x700   :  { %v4437_v55 = vpop.f32.mrf.mxu0 }
 0x701   :  { %v3274_v56 = vpop.f32.mrf.mxu1 }
 0x702   :  { %v3278_v4 = vadd.f32 %v3274_v56, %v3190_v62 }
 0x703   :  { %v4456_v59 = vpop.f32.mrf.mxu1 }
 0x710   :  { %v3362_v5 = vpop.f32.mrf.mxu0 }
 0x711   :  { %v3366_v13 = vadd.f32 %v3362_v5, %v3278_v4 }
 0x712   :  { %v4475_v3 = vpop.f32.mrf.mxu0  ;;  %v3450_v6 = vpop.f32.mrf.mxu1 }
 0x713   :  { %v3454_v9 = vadd.f32 %v3450_v6, %v3366_v13 }
 0x714   :  { %v4494_v63 = vpop.f32.mrf.mxu1 }
 0x715   :  { %v3462_v0 = vadd.f32 %v3741_v14, %v3454_v9 }
 0x717   :  { %v3463_v10 = vmax.f32 %v3462_v0, 0.0 }
 0x719   :  { %4504 = vmatmul.mubr.msk.f32.vlgmr.msra.gmra.mxu0 %vm87_vm0, %v3463_v10 }
 0x7d9   :  { %v3544_v18 = vpop.f32.mrf.mxu0 }
 0x7da   :  { %v3545_v19 = vadd.f32 %v3742_v12, %v3544_v18 }
 0x7db   :  { %v4505_v20 = vpop.f32.mrf.mxu0 }
 0x7dc   :  { %v3548_v8 = vmax.f32 %v3545_v19, 0.0 }
 0x7de   :  { %3550 = vst.msk [vmem:[#allocation2] sm:$0x3] %vm3549_vm11, %v3548_v8 }
 0x7df   :  { %4520 = shalt.err (!%p4517_p4)
}
 0x7e0   :  { %3560 = dma.vmem_to_hbm [thread:$0]  %s3558_s2, 32, %s5629_s23, [#allocation3]  }
 0x7e1   :  { %4529 = dma.done.wait [#allocation3], 32  }
 0x7e2   :  { %4530 = vsyncadd [#allocation3], 4294967264 }
 0x7e3   :  { %3564 = vsyncpa [#allocation3], 1 }

</bundles_post_ra>
